<compile_context>
chip_gen: v7x
topology: tpu7x:2x2x1
jax: 0.10.0
libtpu: 0.0.40
codegen_flags: <defaults>
</compile_context>

<pallas_src>
import numpy as np

import jax
import jax.numpy as jnp
from jax.experimental import pallas as pl
from jax.experimental.pallas import tpu as pltpu

WINDOW_SIZE = 11


def _gaussian_1d(window_size: int, sigma: float = 1.5) -> np.ndarray:
    # Matches gaussian() from the PyTorch module (normalized 1-D Gaussian);
    # create_window() is its outer product, i.e. exactly separable.
    xs = np.arange(window_size)
    g = np.exp(-((xs - window_size // 2) ** 2) / (2.0 * sigma ** 2))
    return (g / g.sum()).astype(np.float64)


def _make_ssim_kernel(C, H, W, P, ws, g1d):
    """Kernel over one packed (H, P) plane-group: P lanes = C*W (padded)."""
    Ho, Wo = H - ws + 1, W - ws + 1
    CW = C * W
    Wacc = CW - ws + 1            # width needed so every valid column is covered
    g = [float(v) for v in g1d]   # compile-time constants

    def kernel(c_ref, img1_ref, img2_ref, out_ref, prod_ref):
        # ---- load inputs (native dtype DMA'd; cast in-kernel) --------------
        x1 = img1_ref[0].astype(jnp.float32)     # (H, P)
        x2 = img2_ref[0].astype(jnp.float32)     # (H, P)

        # ---- hoist the three products out of the tap loops -----------------
        prod_ref[0] = x1 * x1
        prod_ref[1] = x2 * x2
        prod_ref[2] = x1 * x2

        # ---- vertical (sublane) pass: shifted Ref loads, 11 taps ------------
        v_mu1 = jnp.zeros((Ho, P), jnp.float32)
        v_mu2 = jnp.zeros((Ho, P), jnp.float32)
        v_s11 = jnp.zeros((Ho, P), jnp.float32)
        v_s22 = jnp.zeros((Ho, P), jnp.float32)
        v_s12 = jnp.zeros((Ho, P), jnp.float32)
        for di in range(ws):
            gv = g[di]
            a = img1_ref[0, pl.ds(di, Ho), :].astype(jnp.float32)
            b = img2_ref[0, pl.ds(di, Ho), :].astype(jnp.float32)
            v_mu1 = v_mu1 + gv * a
            v_mu2 = v_mu2 + gv * b
            v_s11 = v_s11 + gv * prod_ref[0, pl.ds(di, Ho), :]
            v_s22 = v_s22 + gv * prod_ref[1, pl.ds(di, Ho), :]
            v_s12 = v_s12 + gv * prod_ref[2, pl.ds(di, Ho), :]

        # ---- horizontal (lane) pass: 11 taps on the 5 reduced planes --------
        # Channels sit side-by-side along lanes; a shift by dj never reads past
        # column c*W + W - 1 for the columns we keep, so no cross-channel mix
        # leaks into the per-channel valid windows summed below.
        mu1 = jnp.zeros((Ho, Wacc), jnp.float32)
        mu2 = jnp.zeros((Ho, Wacc), jnp.float32)
        s11 = jnp.zeros((Ho, Wacc), jnp.float32)
        s22 = jnp.zeros((Ho, Wacc), jnp.float32)
        s12 = jnp.zeros((Ho, Wacc), jnp.float32)
        for dj in range(ws):
            gh = g[dj]
            mu1 = mu1 + gh * v_mu1[:, dj:dj + Wacc]
            mu2 = mu2 + gh * v_mu2[:, dj:dj + Wacc]
            s11 = s11 + gh * v_s11[:, dj:dj + Wacc]
            s22 = s22 + gh * v_s22[:, dj:dj + Wacc]
            s12 = s12 + gh * v_s12[:, dj:dj + Wacc]

        # ---- SSIM map (elementwise) -----------------------------------------
        c1 = c_ref[0]   # (0.01 * L)**2
        c2 = c_ref[1]   # (0.03 * L)**2
        mu1_sq = mu1 * mu1
        mu2_sq = mu2 * mu2
        mu1_mu2 = mu1 * mu2
        sigma1_sq = s11 - mu1_sq
        sigma2_sq = s22 - mu2_sq
        sigma12 = s12 - mu1_mu2
        v1 = 2.0 * sigma12 + c2
        v2 = sigma1_sq + sigma2_sq + c2
        num = (2.0 * mu1_mu2 + c1) * v1
        den = (mu1_sq + mu2_sq + c1) * v2
        ssim_map = num * pl.reciprocal(den, approx=True)

        # ---- sum only the valid Wo columns of each channel segment ----------
        acc = jnp.sum(ssim_map[:, 0:Wo], keepdims=True)
        for c in range(1, C):
            acc = acc + jnp.sum(ssim_map[:, c * W:c * W + Wo], keepdims=True)
        out_ref[0] = acc   # per-(n) partial sum; mean taken in the wrapper

    return kernel


def ssim_pallas(img1, img2, window_size: int = WINDOW_SIZE, val_range=None):
    """Equivalent of SSIM(window_size=11, size_average=True).forward(img1, img2)."""
    N, C, H, W = img1.shape
    ws = min(window_size, H, W)               # real_size in the PyTorch code
    Ho, Wo = H - ws + 1, W - ws + 1
    g1d = _gaussian_1d(ws, 1.5)

    # Dynamic-range heuristic (plain JAX glue on the native dtype).
    if val_range is None:
        max_val = jnp.where(jnp.max(img1) > 128.0, 255.0, 1.0)
        min_val = jnp.where(jnp.min(img1) < -0.5, -1.0, 0.0)
        L = (max_val - min_val).astype(jnp.float32)
    else:
        L = jnp.float32(val_range)
    C1 = (0.01 * L) ** 2
    C2 = (0.03 * L) ** 2
    cvals = jnp.stack([C1, C2]).astype(jnp.float32)   # -> SMEM scalars

    # Pack channels along lanes: (N, C, H, W) -> (N, H, C*W), pad lanes to 128x.
    packed1 = jnp.transpose(img1, (0, 2, 1, 3)).reshape(N, H, C * W)
    packed2 = jnp.transpose(img2, (0, 2, 1, 3)).reshape(N, H, C * W)
    P = ((C * W + 127) // 128) * 128
    pad = P - C * W
    if pad:
        packed1 = jnp.pad(packed1, ((0, 0), (0, 0), (0, pad)))
        packed2 = jnp.pad(packed2, ((0, 0), (0, 0), (0, pad)))

    kernel = _make_ssim_kernel(C, H, W, P, ws, g1d)

    partial = pl.pallas_call(
        kernel,
        out_shape=jax.ShapeDtypeStruct((N, 1, 1), jnp.float32),
        grid_spec=pltpu.PrefetchScalarGridSpec(
            num_scalar_prefetch=0,
            grid=(N,),
            in_specs=[
                pl.BlockSpec(memory_space=pltpu.MemorySpace.SMEM),     # C1, C2
                pl.BlockSpec((1, H, P), lambda n: (n, 0, 0)),          # img1 planes
                pl.BlockSpec((1, H, P), lambda n: (n, 0, 0)),          # img2 planes
            ],
            out_specs=pl.BlockSpec((1, 1, 1), lambda n: (n, 0, 0)),    # partial sums
            scratch_shapes=[pltpu.VMEM((3, H, P), jnp.float32)],       # x1^2, x2^2, x1*x2
        ),
        compiler_params=pltpu.CompilerParams(
            dimension_semantics=("parallel",)),
    )(cvals, packed1, packed2)

    return jnp.sum(partial) / float(N * C * Ho * Wo)


def ssim_reference(img1, img2, window_size: int = WINDOW_SIZE, val_range=None):
    """Pure-JAX reference mirroring the PyTorch ssim() semantics (direct 2-D conv)."""
    img1 = img1.astype(jnp.float32)
    img2 = img2.astype(jnp.float32)
    N, C, H, W = img1.shape
    ws = min(window_size, H, W)
    Ho, Wo = H - ws + 1, W - ws + 1
    g = jnp.asarray(_gaussian_1d(ws, 1.5), dtype=jnp.float32)
    w2d = jnp.outer(g, g)

    def conv(x):
        acc = jnp.zeros((N, C, Ho, Wo), jnp.float32)
        for di in range(ws):
            for dj in range(ws):
                acc = acc + w2d[di, dj] * x[:, :, di:di + Ho, dj:dj + Wo]
        return acc

    if val_range is None:
        max_val = jnp.where(jnp.max(img1) > 128.0, 255.0, 1.0)
        min_val = jnp.where(jnp.min(img1) < -0.5, -1.0, 0.0)
        L = max_val - min_val
    else:
        L = jnp.float32(val_range)
    C1 = (0.01 * L) ** 2
    C2 = (0.03 * L) ** 2

    mu1, mu2 = conv(img1), conv(img2)
    mu1_sq, mu2_sq, mu1_mu2 = mu1 * mu1, mu2 * mu2, mu1 * mu2
    sigma1_sq = conv(img1 * img1) - mu1_sq
    sigma2_sq = conv(img2 * img2) - mu2_sq
    sigma12 = conv(img1 * img2) - mu1_mu2
    v1 = 2.0 * sigma12 + C2
    v2 = sigma1_sq + sigma2_sq + C2
    ssim_map = (2.0 * mu1_mu2 + C1) * v1 / ((mu1_sq + mu2_sq + C1) * v2)
    return jnp.mean(ssim_map)


if __name__ == "__main__":
    key = jax.random.PRNGKey(0)
    k1, k2 = jax.random.split(key)
    # batch=2, channels=4, spatial=16 (>= window_size=11 so "valid" conv is 6x6)
    img1 = jax.random.normal(k1, (2, 4, 16, 16), dtype=jnp.float32)
    img2 = jax.random.normal(k2, (2, 4, 16, 16), dtype=jnp.float32)

    result = jax.block_until_ready(ssim_pallas(img1, img2))
    ref = jax.block_until_ready(ssim_reference(img1, img2))

    assert np.isfinite(float(result)), "non-finite SSIM result"
    np.testing.assert_allclose(np.asarray(result), np.asarray(ref),
                               rtol=1e-3, atol=1e-3)
    print("KERNEL_OK")
</pallas_src>

<mosaic_0001>
module attributes {stable_mosaic.version = 11 : i64} {
  func.func @kernel(%arg0: i32, %arg1: memref<2xf32, #tpu.memory_space<smem>>, %arg2: memref<1x16x128xf32, #tpu.memory_space<vmem>>, %arg3: memref<1x16x128xf32, #tpu.memory_space<vmem>>, %arg4: memref<1x1x1xf32, #tpu.memory_space<vmem>>, %arg5: memref<3x16x128xf32, #tpu.memory_space<vmem>>) attributes {dimension_semantics = [#tpu.dimension_semantics<parallel>], iteration_bounds = array<i64: 2>, scalar_prefetch = 0 : i64, scratch_operands = 1 : i64, tpu.core_type = #tpu.core_type<tc>, window_params = [{transform_indices = @transform_0, window_bounds = array<i64: 2>}, {transform_indices = @transform_1, window_bounds = array<i64: 1, 16, 128>}, {transform_indices = @transform_2, window_bounds = array<i64: 1, 16, 128>}, {transform_indices = @transform_3, window_bounds = array<i64: 1, 1, 1>}]} {
    %c0 = arith.constant 0 : index
    %c0_0 = arith.constant 0 : index
    %c0_1 = arith.constant 0 : index
    %0 = vector.load %arg2[%c0, %c0_0, %c0_1] : memref<1x16x128xf32, #tpu.memory_space<vmem>>, vector<1x16x128xf32>
    %1 = vector.shape_cast %0 : vector<1x16x128xf32> to vector<16x128xf32>
    %c0_2 = arith.constant 0 : index
    %c0_3 = arith.constant 0 : index
    %c0_4 = arith.constant 0 : index
    %2 = vector.load %arg3[%c0_2, %c0_3, %c0_4] : memref<1x16x128xf32, #tpu.memory_space<vmem>>, vector<1x16x128xf32>
    %3 = vector.shape_cast %2 : vector<1x16x128xf32> to vector<16x128xf32>
    %4 = arith.mulf %1, %1 : vector<16x128xf32>
    %c0_5 = arith.constant 0 : index
    %c0_6 = arith.constant 0 : index
    %c0_7 = arith.constant 0 : index
    %5 = vector.load %arg5[%c0_5, %c0_6, %c0_7] : memref<3x16x128xf32, #tpu.memory_space<vmem>>, vector<1x16x128xf32>
    %6 = vector.shape_cast %5 : vector<1x16x128xf32> to vector<16x128xf32>
    %7 = vector.shape_cast %4 : vector<16x128xf32> to vector<1x16x128xf32>
    tpu.vector_store %arg5[%c0_5, %c0_6, %c0_7], %7 {strides = array<i32>} : memref<3x16x128xf32, #tpu.memory_space<vmem>>, vector<1x16x128xf32>,
    %8 = arith.mulf %3, %3 : vector<16x128xf32>
    %c1 = arith.constant 1 : index
    %c0_8 = arith.constant 0 : index
    %c0_9 = arith.constant 0 : index
    %9 = vector.load %arg5[%c1, %c0_8, %c0_9] : memref<3x16x128xf32, #tpu.memory_space<vmem>>, vector<1x16x128xf32>
    %10 = vector.shape_cast %9 : vector<1x16x128xf32> to vector<16x128xf32>
    %11 = vector.shape_cast %8 : vector<16x128xf32> to vector<1x16x128xf32>
    tpu.vector_store %arg5[%c1, %c0_8, %c0_9], %11 {strides = array<i32>} : memref<3x16x128xf32, #tpu.memory_space<vmem>>, vector<1x16x128xf32>,
    %12 = arith.mulf %1, %3 : vector<16x128xf32>
    %c2 = arith.constant 2 : index
    %c0_10 = arith.constant 0 : index
    %c0_11 = arith.constant 0 : index
    %13 = vector.load %arg5[%c2, %c0_10, %c0_11] : memref<3x16x128xf32, #tpu.memory_space<vmem>>, vector<1x16x128xf32>
    %14 = vector.shape_cast %13 : vector<1x16x128xf32> to vector<16x128xf32>
    %15 = vector.shape_cast %12 : vector<16x128xf32> to vector<1x16x128xf32>
    tpu.vector_store %arg5[%c2, %c0_10, %c0_11], %15 {strides = array<i32>} : memref<3x16x128xf32, #tpu.memory_space<vmem>>, vector<1x16x128xf32>,
    %cst = arith.constant 0.000000e+00 : f32
    %16 = vector.broadcast %cst : f32 to vector<6x128xf32>
    %cst_12 = arith.constant 0.000000e+00 : f32
    %17 = vector.broadcast %cst_12 : f32 to vector<6x128xf32>
    %cst_13 = arith.constant 0.000000e+00 : f32
    %18 = vector.broadcast %cst_13 : f32 to vector<6x128xf32>
    %cst_14 = arith.constant 0.000000e+00 : f32
    %19 = vector.broadcast %cst_14 : f32 to vector<6x128xf32>
    %cst_15 = arith.constant 0.000000e+00 : f32
    %20 = vector.broadcast %cst_15 : f32 to vector<6x128xf32>
    %c0_16 = arith.constant 0 : index
    %c0_17 = arith.constant 0 : index
    %c0_18 = arith.constant 0 : index
    %21 = vector.load %arg2[%c0_16, %c0_17, %c0_18] : memref<1x16x128xf32, #tpu.memory_space<vmem>>, vector<1x6x128xf32>
    %22 = vector.shape_cast %21 : vector<1x6x128xf32> to vector<6x128xf32>
    %c0_19 = arith.constant 0 : index
    %c0_20 = arith.constant 0 : index
    %c0_21 = arith.constant 0 : index
    %23 = vector.load %arg3[%c0_19, %c0_20, %c0_21] : memref<1x16x128xf32, #tpu.memory_space<vmem>>, vector<1x6x128xf32>
    %24 = vector.shape_cast %23 : vector<1x6x128xf32> to vector<6x128xf32>
    %cst_22 = arith.constant 0.00102838012 : f32
    %25 = vector.broadcast %cst_22 : f32 to vector<6x128xf32>
    %26 = arith.mulf %25, %22 : vector<6x128xf32>
    %27 = arith.addf %16, %26 : vector<6x128xf32>
    %cst_23 = arith.constant 0.00102838012 : f32
    %28 = vector.broadcast %cst_23 : f32 to vector<6x128xf32>
    %29 = arith.mulf %28, %24 : vector<6x128xf32>
    %30 = arith.addf %17, %29 : vector<6x128xf32>
    %c0_24 = arith.constant 0 : index
    %c0_25 = arith.constant 0 : index
    %c0_26 = arith.constant 0 : index
    %31 = vector.load %arg5[%c0_24, %c0_25, %c0_26] : memref<3x16x128xf32, #tpu.memory_space<vmem>>, vector<1x6x128xf32>
    %32 = vector.shape_cast %31 : vector<1x6x128xf32> to vector<6x128xf32>
    %cst_27 = arith.constant 0.00102838012 : f32
    %33 = vector.broadcast %cst_27 : f32 to vector<6x128xf32>
    %34 = arith.mulf %33, %32 : vector<6x128xf32>
    %35 = arith.addf %18, %34 : vector<6x128xf32>
    %c1_28 = arith.constant 1 : index
    %c0_29 = arith.constant 0 : index
    %c0_30 = arith.constant 0 : index
    %36 = vector.load %arg5[%c1_28, %c0_29, %c0_30] : memref<3x16x128xf32, #tpu.memory_space<vmem>>, vector<1x6x128xf32>
    %37 = vector.shape_cast %36 : vector<1x6x128xf32> to vector<6x128xf32>
    %cst_31 = arith.constant 0.00102838012 : f32
    %38 = vector.broadcast %cst_31 : f32 to vector<6x128xf32>
    %39 = arith.mulf %38, %37 : vector<6x128xf32>
    %40 = arith.addf %19, %39 : vector<6x128xf32>
    %c2_32 = arith.constant 2 : index
    %c0_33 = arith.constant 0 : index
    %c0_34 = arith.constant 0 : index
    %41 = vector.load %arg5[%c2_32, %c0_33, %c0_34] : memref<3x16x128xf32, #tpu.memory_space<vmem>>, vector<1x6x128xf32>
    %42 = vector.shape_cast %41 : vector<1x6x128xf32> to vector<6x128xf32>
    %cst_35 = arith.constant 0.00102838012 : f32
    %43 = vector.broadcast %cst_35 : f32 to vector<6x128xf32>
    %44 = arith.mulf %43, %42 : vector<6x128xf32>
    %45 = arith.addf %20, %44 : vector<6x128xf32>
    %c0_36 = arith.constant 0 : index
    %c1_37 = arith.constant 1 : index
    %c0_38 = arith.constant 0 : index
    %46 = vector.load %arg2[%c0_36, %c1_37, %c0_38] : memref<1x16x128xf32, #tpu.memory_space<vmem>>, vector<1x6x128xf32>
    %47 = vector.shape_cast %46 : vector<1x6x128xf32> to vector<6x128xf32>
    %c0_39 = arith.constant 0 : index
    %c1_40 = arith.constant 1 : index
    %c0_41 = arith.constant 0 : index
    %48 = vector.load %arg3[%c0_39, %c1_40, %c0_41] : memref<1x16x128xf32, #tpu.memory_space<vmem>>, vector<1x6x128xf32>
    %49 = vector.shape_cast %48 : vector<1x6x128xf32> to vector<6x128xf32>
    %cst_42 = arith.constant 0.00759875821 : f32
    %50 = vector.broadcast %cst_42 : f32 to vector<6x128xf32>
    %51 = arith.mulf %50, %47 : vector<6x128xf32>
    %52 = arith.addf %27, %51 : vector<6x128xf32>
    %cst_43 = arith.constant 0.00759875821 : f32
    %53 = vector.broadcast %cst_43 : f32 to vector<6x128xf32>
    %54 = arith.mulf %53, %49 : vector<6x128xf32>
    %55 = arith.addf %30, %54 : vector<6x128xf32>
    %c0_44 = arith.constant 0 : index
    %c1_45 = arith.constant 1 : index
    %c0_46 = arith.constant 0 : index
    %56 = vector.load %arg5[%c0_44, %c1_45, %c0_46] : memref<3x16x128xf32, #tpu.memory_space<vmem>>, vector<1x6x128xf32>
    %57 = vector.shape_cast %56 : vector<1x6x128xf32> to vector<6x128xf32>
    %cst_47 = arith.constant 0.00759875821 : f32
    %58 = vector.broadcast %cst_47 : f32 to vector<6x128xf32>
    %59 = arith.mulf %58, %57 : vector<6x128xf32>
    %60 = arith.addf %35, %59 : vector<6x128xf32>
    %c1_48 = arith.constant 1 : index
    %c1_49 = arith.constant 1 : index
    %c0_50 = arith.constant 0 : index
    %61 = vector.load %arg5[%c1_48, %c1_49, %c0_50] : memref<3x16x128xf32, #tpu.memory_space<vmem>>, vector<1x6x128xf32>
    %62 = vector.shape_cast %61 : vector<1x6x128xf32> to vector<6x128xf32>
    %cst_51 = arith.constant 0.00759875821 : f32
    %63 = vector.broadcast %cst_51 : f32 to vector<6x128xf32>
    %64 = arith.mulf %63, %62 : vector<6x128xf32>
    %65 = arith.addf %40, %64 : vector<6x128xf32>
    %c2_52 = arith.constant 2 : index
    %c1_53 = arith.constant 1 : index
    %c0_54 = arith.constant 0 : index
    %66 = vector.load %arg5[%c2_52, %c1_53, %c0_54] : memref<3x16x128xf32, #tpu.memory_space<vmem>>, vector<1x6x128xf32>
    %67 = vector.shape_cast %66 : vector<1x6x128xf32> to vector<6x128xf32>
    %cst_55 = arith.constant 0.00759875821 : f32
    %68 = vector.broadcast %cst_55 : f32 to vector<6x128xf32>
    %69 = arith.mulf %68, %67 : vector<6x128xf32>
    %70 = arith.addf %45, %69 : vector<6x128xf32>
    %c0_56 = arith.constant 0 : index
    %c2_57 = arith.constant 2 : index
    %c0_58 = arith.constant 0 : index
    %71 = vector.load %arg2[%c0_56, %c2_57, %c0_58] : memref<1x16x128xf32, #tpu.memory_space<vmem>>, vector<1x6x128xf32>
    %72 = vector.shape_cast %71 : vector<1x6x128xf32> to vector<6x128xf32>
    %c0_59 = arith.constant 0 : index
    %c2_60 = arith.constant 2 : index
    %c0_61 = arith.constant 0 : index
    %73 = vector.load %arg3[%c0_59, %c2_60, %c0_61] : memref<1x16x128xf32, #tpu.memory_space<vmem>>, vector<1x6x128xf32>
    %74 = vector.shape_cast %73 : vector<1x6x128xf32> to vector<6x128xf32>
    %cst_62 = arith.constant 0.0360007733 : f32
    %75 = vector.broadcast %cst_62 : f32 to vector<6x128xf32>
    %76 = arith.mulf %75, %72 : vector<6x128xf32>
    %77 = arith.addf %52, %76 : vector<6x128xf32>
    %cst_63 = arith.constant 0.0360007733 : f32
    %78 = vector.broadcast %cst_63 : f32 to vector<6x128xf32>
    %79 = arith.mulf %78, %74 : vector<6x128xf32>
    %80 = arith.addf %55, %79 : vector<6x128xf32>
    %c0_64 = arith.constant 0 : index
    %c2_65 = arith.constant 2 : index
    %c0_66 = arith.constant 0 : index
    %81 = vector.load %arg5[%c0_64, %c2_65, %c0_66] : memref<3x16x128xf32, #tpu.memory_space<vmem>>, vector<1x6x128xf32>
    %82 = vector.shape_cast %81 : vector<1x6x128xf32> to vector<6x128xf32>
    %cst_67 = arith.constant 0.0360007733 : f32
    %83 = vector.broadcast %cst_67 : f32 to vector<6x128xf32>
    %84 = arith.mulf %83, %82 : vector<6x128xf32>
    %85 = arith.addf %60, %84 : vector<6x128xf32>
    %c1_68 = arith.constant 1 : index
    %c2_69 = arith.constant 2 : index
    %c0_70 = arith.constant 0 : index
    %86 = vector.load %arg5[%c1_68, %c2_69, %c0_70] : memref<3x16x128xf32, #tpu.memory_space<vmem>>, vector<1x6x128xf32>
    %87 = vector.shape_cast %86 : vector<1x6x128xf32> to vector<6x128xf32>
    %cst_71 = arith.constant 0.0360007733 : f32
    %88 = vector.broadcast %cst_71 : f32 to vector<6x128xf32>
    %89 = arith.mulf %88, %87 : vector<6x128xf32>
    %90 = arith.addf %65, %89 : vector<6x128xf32>
    %c2_72 = arith.constant 2 : index
    %c2_73 = arith.constant 2 : index
    %c0_74 = arith.constant 0 : index
    %91 = vector.load %arg5[%c2_72, %c2_73, %c0_74] : memref<3x16x128xf32, #tpu.memory_space<vmem>>, vector<1x6x128xf32>
    %92 = vector.shape_cast %91 : vector<1x6x128xf32> to vector<6x128xf32>
    %cst_75 = arith.constant 0.0360007733 : f32
    %93 = vector.broadcast %cst_75 : f32 to vector<6x128xf32>
    %94 = arith.mulf %93, %92 : vector<6x128xf32>
    %95 = arith.addf %70, %94 : vector<6x128xf32>
    %c0_76 = arith.constant 0 : index
    %c3 = arith.constant 3 : index
    %c0_77 = arith.constant 0 : index
    %96 = vector.load %arg2[%c0_76, %c3, %c0_77] : memref<1x16x128xf32, #tpu.memory_space<vmem>>, vector<1x6x128xf32>
    %97 = vector.shape_cast %96 : vector<1x6x128xf32> to vector<6x128xf32>
    %c0_78 = arith.constant 0 : index
    %c3_79 = arith.constant 3 : index
    %c0_80 = arith.constant 0 : index
    %98 = vector.load %arg3[%c0_78, %c3_79, %c0_80] : memref<1x16x128xf32, #tpu.memory_space<vmem>>, vector<1x6x128xf32>
    %99 = vector.shape_cast %98 : vector<1x6x128xf32> to vector<6x128xf32>
    %cst_81 = arith.constant 0.109360687 : f32
    %100 = vector.broadcast %cst_81 : f32 to vector<6x128xf32>
    %101 = arith.mulf %100, %97 : vector<6x128xf32>
    %102 = arith.addf %77, %101 : vector<6x128xf32>
    %cst_82 = arith.constant 0.109360687 : f32
    %103 = vector.broadcast %cst_82 : f32 to vector<6x128xf32>
    %104 = arith.mulf %103, %99 : vector<6x128xf32>
    %105 = arith.addf %80, %104 : vector<6x128xf32>
    %c0_83 = arith.constant 0 : index
    %c3_84 = arith.constant 3 : index
    %c0_85 = arith.constant 0 : index
    %106 = vector.load %arg5[%c0_83, %c3_84, %c0_85] : memref<3x16x128xf32, #tpu.memory_space<vmem>>, vector<1x6x128xf32>
    %107 = vector.shape_cast %106 : vector<1x6x128xf32> to vector<6x128xf32>
    %cst_86 = arith.constant 0.109360687 : f32
    %108 = vector.broadcast %cst_86 : f32 to vector<6x128xf32>
    %109 = arith.mulf %108, %107 : vector<6x128xf32>
    %110 = arith.addf %85, %109 : vector<6x128xf32>
    %c1_87 = arith.constant 1 : index
    %c3_88 = arith.constant 3 : index
    %c0_89 = arith.constant 0 : index
    %111 = vector.load %arg5[%c1_87, %c3_88, %c0_89] : memref<3x16x128xf32, #tpu.memory_space<vmem>>, vector<1x6x128xf32>
    %112 = vector.shape_cast %111 : vector<1x6x128xf32> to vector<6x128xf32>
    %cst_90 = arith.constant 0.109360687 : f32
    %113 = vector.broadcast %cst_90 : f32 to vector<6x128xf32>
    %114 = arith.mulf %113, %112 : vector<6x128xf32>
    %115 = arith.addf %90, %114 : vector<6x128xf32>
    %c2_91 = arith.constant 2 : index
    %c3_92 = arith.constant 3 : index
    %c0_93 = arith.constant 0 : index
    %116 = vector.load %arg5[%c2_91, %c3_92, %c0_93] : memref<3x16x128xf32, #tpu.memory_space<vmem>>, vector<1x6x128xf32>
    %117 = vector.shape_cast %116 : vector<1x6x128xf32> to vector<6x128xf32>
    %cst_94 = arith.constant 0.109360687 : f32
    %118 = vector.broadcast %cst_94 : f32 to vector<6x128xf32>
    %119 = arith.mulf %118, %117 : vector<6x128xf32>
    %120 = arith.addf %95, %119 : vector<6x128xf32>
    %c0_95 = arith.constant 0 : index
    %c4 = arith.constant 4 : index
    %c0_96 = arith.constant 0 : index
    %121 = vector.load %arg2[%c0_95, %c4, %c0_96] : memref<1x16x128xf32, #tpu.memory_space<vmem>>, vector<1x6x128xf32>
    %122 = vector.shape_cast %121 : vector<1x6x128xf32> to vector<6x128xf32>
    %c0_97 = arith.constant 0 : index
    %c4_98 = arith.constant 4 : index
    %c0_99 = arith.constant 0 : index
    %123 = vector.load %arg3[%c0_97, %c4_98, %c0_99] : memref<1x16x128xf32, #tpu.memory_space<vmem>>, vector<1x6x128xf32>
    %124 = vector.shape_cast %123 : vector<1x6x128xf32> to vector<6x128xf32>
    %cst_100 = arith.constant 0.213005543 : f32
    %125 = vector.broadcast %cst_100 : f32 to vector<6x128xf32>
    %126 = arith.mulf %125, %122 : vector<6x128xf32>
    %127 = arith.addf %102, %126 : vector<6x128xf32>
    %cst_101 = arith.constant 0.213005543 : f32
    %128 = vector.broadcast %cst_101 : f32 to vector<6x128xf32>
    %129 = arith.mulf %128, %124 : vector<6x128xf32>
    %130 = arith.addf %105, %129 : vector<6x128xf32>
    %c0_102 = arith.constant 0 : index
    %c4_103 = arith.constant 4 : index
    %c0_104 = arith.constant 0 : index
    %131 = vector.load %arg5[%c0_102, %c4_103, %c0_104] : memref<3x16x128xf32, #tpu.memory_space<vmem>>, vector<1x6x128xf32>
    %132 = vector.shape_cast %131 : vector<1x6x128xf32> to vector<6x128xf32>
    %cst_105 = arith.constant 0.213005543 : f32
    %133 = vector.broadcast %cst_105 : f32 to vector<6x128xf32>
    %134 = arith.mulf %133, %132 : vector<6x128xf32>
    %135 = arith.addf %110, %134 : vector<6x128xf32>
    %c1_106 = arith.constant 1 : index
    %c4_107 = arith.constant 4 : index
    %c0_108 = arith.constant 0 : index
    %136 = vector.load %arg5[%c1_106, %c4_107, %c0_108] : memref<3x16x128xf32, #tpu.memory_space<vmem>>, vector<1x6x128xf32>
    %137 = vector.shape_cast %136 : vector<1x6x128xf32> to vector<6x128xf32>
    %cst_109 = arith.constant 0.213005543 : f32
    %138 = vector.broadcast %cst_109 : f32 to vector<6x128xf32>
    %139 = arith.mulf %138, %137 : vector<6x128xf32>
    %140 = arith.addf %115, %139 : vector<6x128xf32>
    %c2_110 = arith.constant 2 : index
    %c4_111 = arith.constant 4 : index
    %c0_112 = arith.constant 0 : index
    %141 = vector.load %arg5[%c2_110, %c4_111, %c0_112] : memref<3x16x128xf32, #tpu.memory_space<vmem>>, vector<1x6x128xf32>
    %142 = vector.shape_cast %141 : vector<1x6x128xf32> to vector<6x128xf32>
    %cst_113 = arith.constant 0.213005543 : f32
    %143 = vector.broadcast %cst_113 : f32 to vector<6x128xf32>
    %144 = arith.mulf %143, %142 : vector<6x128xf32>
    %145 = arith.addf %120, %144 : vector<6x128xf32>
    %c0_114 = arith.constant 0 : index
    %c5 = arith.constant 5 : index
    %c0_115 = arith.constant 0 : index
    %146 = vector.load %arg2[%c0_114, %c5, %c0_115] : memref<1x16x128xf32, #tpu.memory_space<vmem>>, vector<1x6x128xf32>
    %147 = vector.shape_cast %146 : vector<1x6x128xf32> to vector<6x128xf32>
    %c0_116 = arith.constant 0 : index
    %c5_117 = arith.constant 5 : index
    %c0_118 = arith.constant 0 : index
    %148 = vector.load %arg3[%c0_116, %c5_117, %c0_118] : memref<1x16x128xf32, #tpu.memory_space<vmem>>, vector<1x6x128xf32>
    %149 = vector.shape_cast %148 : vector<1x6x128xf32> to vector<6x128xf32>
    %cst_119 = arith.constant 0.266011715 : f32
    %150 = vector.broadcast %cst_119 : f32 to vector<6x128xf32>
    %151 = arith.mulf %150, %147 : vector<6x128xf32>
    %152 = arith.addf %127, %151 : vector<6x128xf32>
    %cst_120 = arith.constant 0.266011715 : f32
    %153 = vector.broadcast %cst_120 : f32 to vector<6x128xf32>
    %154 = arith.mulf %153, %149 : vector<6x128xf32>
    %155 = arith.addf %130, %154 : vector<6x128xf32>
    %c0_121 = arith.constant 0 : index
    %c5_122 = arith.constant 5 : index
    %c0_123 = arith.constant 0 : index
    %156 = vector.load %arg5[%c0_121, %c5_122, %c0_123] : memref<3x16x128xf32, #tpu.memory_space<vmem>>, vector<1x6x128xf32>
    %157 = vector.shape_cast %156 : vector<1x6x128xf32> to vector<6x128xf32>
    %cst_124 = arith.constant 0.266011715 : f32
    %158 = vector.broadcast %cst_124 : f32 to vector<6x128xf32>
    %159 = arith.mulf %158, %157 : vector<6x128xf32>
    %160 = arith.addf %135, %159 : vector<6x128xf32>
    %c1_125 = arith.constant 1 : index
    %c5_126 = arith.constant 5 : index
    %c0_127 = arith.constant 0 : index
    %161 = vector.load %arg5[%c1_125, %c5_126, %c0_127] : memref<3x16x128xf32, #tpu.memory_space<vmem>>, vector<1x6x128xf32>
    %162 = vector.shape_cast %161 : vector<1x6x128xf32> to vector<6x128xf32>
    %cst_128 = arith.constant 0.266011715 : f32
    %163 = vector.broadcast %cst_128 : f32 to vector<6x128xf32>
    %164 = arith.mulf %163, %162 : vector<6x128xf32>
    %165 = arith.addf %140, %164 : vector<6x128xf32>
    %c2_129 = arith.constant 2 : index
    %c5_130 = arith.constant 5 : index
    %c0_131 = arith.constant 0 : index
    %166 = vector.load %arg5[%c2_129, %c5_130, %c0_131] : memref<3x16x128xf32, #tpu.memory_space<vmem>>, vector<1x6x128xf32>
    %167 = vector.shape_cast %166 : vector<1x6x128xf32> to vector<6x128xf32>
    %cst_132 = arith.constant 0.266011715 : f32
    %168 = vector.broadcast %cst_132 : f32 to vector<6x128xf32>
    %169 = arith.mulf %168, %167 : vector<6x128xf32>
    %170 = arith.addf %145, %169 : vector<6x128xf32>
    %c0_133 = arith.constant 0 : index
    %c6 = arith.constant 6 : index
    %c0_134 = arith.constant 0 : index
    %171 = vector.load %arg2[%c0_133, %c6, %c0_134] : memref<1x16x128xf32, #tpu.memory_space<vmem>>, vector<1x6x128xf32>
    %172 = vector.shape_cast %171 : vector<1x6x128xf32> to vector<6x128xf32>
    %c0_135 = arith.constant 0 : index
    %c6_136 = arith.constant 6 : index
    %c0_137 = arith.constant 0 : index
    %173 = vector.load %arg3[%c0_135, %c6_136, %c0_137] : memref<1x16x128xf32, #tpu.memory_space<vmem>>, vector<1x6x128xf32>
    %174 = vector.shape_cast %173 : vector<1x6x128xf32> to vector<6x128xf32>
    %cst_138 = arith.constant 0.213005543 : f32
    %175 = vector.broadcast %cst_138 : f32 to vector<6x128xf32>
    %176 = arith.mulf %175, %172 : vector<6x128xf32>
    %177 = arith.addf %152, %176 : vector<6x128xf32>
    %cst_139 = arith.constant 0.213005543 : f32
    %178 = vector.broadcast %cst_139 : f32 to vector<6x128xf32>
    %179 = arith.mulf %178, %174 : vector<6x128xf32>
    %180 = arith.addf %155, %179 : vector<6x128xf32>
    %c0_140 = arith.constant 0 : index
    %c6_141 = arith.constant 6 : index
    %c0_142 = arith.constant 0 : index
    %181 = vector.load %arg5[%c0_140, %c6_141, %c0_142] : memref<3x16x128xf32, #tpu.memory_space<vmem>>, vector<1x6x128xf32>
    %182 = vector.shape_cast %181 : vector<1x6x128xf32> to vector<6x128xf32>
    %cst_143 = arith.constant 0.213005543 : f32
    %183 = vector.broadcast %cst_143 : f32 to vector<6x128xf32>
    %184 = arith.mulf %183, %182 : vector<6x128xf32>
    %185 = arith.addf %160, %184 : vector<6x128xf32>
    %c1_144 = arith.constant 1 : index
    %c6_145 = arith.constant 6 : index
    %c0_146 = arith.constant 0 : index
    %186 = vector.load %arg5[%c1_144, %c6_145, %c0_146] : memref<3x16x128xf32, #tpu.memory_space<vmem>>, vector<1x6x128xf32>
    %187 = vector.shape_cast %186 : vector<1x6x128xf32> to vector<6x128xf32>
    %cst_147 = arith.constant 0.213005543 : f32
    %188 = vector.broadcast %cst_147 : f32 to vector<6x128xf32>
    %189 = arith.mulf %188, %187 : vector<6x128xf32>
    %190 = arith.addf %165, %189 : vector<6x128xf32>
    %c2_148 = arith.constant 2 : index
    %c6_149 = arith.constant 6 : index
    %c0_150 = arith.constant 0 : index
    %191 = vector.load %arg5[%c2_148, %c6_149, %c0_150] : memref<3x16x128xf32, #tpu.memory_space<vmem>>, vector<1x6x128xf32>
    %192 = vector.shape_cast %191 : vector<1x6x128xf32> to vector<6x128xf32>
    %cst_151 = arith.constant 0.213005543 : f32
    %193 = vector.broadcast %cst_151 : f32 to vector<6x128xf32>
    %194 = arith.mulf %193, %192 : vector<6x128xf32>
    %195 = arith.addf %170, %194 : vector<6x128xf32>
    %c0_152 = arith.constant 0 : index
    %c7 = arith.constant 7 : index
    %c0_153 = arith.constant 0 : index
    %196 = vector.load %arg2[%c0_152, %c7, %c0_153] : memref<1x16x128xf32, #tpu.memory_space<vmem>>, vector<1x6x128xf32>
    %197 = vector.shape_cast %196 : vector<1x6x128xf32> to vector<6x128xf32>
    %c0_154 = arith.constant 0 : index
    %c7_155 = arith.constant 7 : index
    %c0_156 = arith.constant 0 : index
    %198 = vector.load %arg3[%c0_154, %c7_155, %c0_156] : memref<1x16x128xf32, #tpu.memory_space<vmem>>, vector<1x6x128xf32>
    %199 = vector.shape_cast %198 : vector<1x6x128xf32> to vector<6x128xf32>
    %cst_157 = arith.constant 0.109360687 : f32
    %200 = vector.broadcast %cst_157 : f32 to vector<6x128xf32>
    %201 = arith.mulf %200, %197 : vector<6x128xf32>
    %202 = arith.addf %177, %201 : vector<6x128xf32>
    %cst_158 = arith.constant 0.109360687 : f32
    %203 = vector.broadcast %cst_158 : f32 to vector<6x128xf32>
    %204 = arith.mulf %203, %199 : vector<6x128xf32>
    %205 = arith.addf %180, %204 : vector<6x128xf32>
    %c0_159 = arith.constant 0 : index
    %c7_160 = arith.constant 7 : index
    %c0_161 = arith.constant 0 : index
    %206 = vector.load %arg5[%c0_159, %c7_160, %c0_161] : memref<3x16x128xf32, #tpu.memory_space<vmem>>, vector<1x6x128xf32>
    %207 = vector.shape_cast %206 : vector<1x6x128xf32> to vector<6x128xf32>
    %cst_162 = arith.constant 0.109360687 : f32
    %208 = vector.broadcast %cst_162 : f32 to vector<6x128xf32>
    %209 = arith.mulf %208, %207 : vector<6x128xf32>
    %210 = arith.addf %185, %209 : vector<6x128xf32>
    %c1_163 = arith.constant 1 : index
    %c7_164 = arith.constant 7 : index
    %c0_165 = arith.constant 0 : index
    %211 = vector.load %arg5[%c1_163, %c7_164, %c0_165] : memref<3x16x128xf32, #tpu.memory_space<vmem>>, vector<1x6x128xf32>
    %212 = vector.shape_cast %211 : vector<1x6x128xf32> to vector<6x128xf32>
    %cst_166 = arith.constant 0.109360687 : f32
    %213 = vector.broadcast %cst_166 : f32 to vector<6x128xf32>
    %214 = arith.mulf %213, %212 : vector<6x128xf32>
    %215 = arith.addf %190, %214 : vector<6x128xf32>
    %c2_167 = arith.constant 2 : index
    %c7_168 = arith.constant 7 : index
    %c0_169 = arith.constant 0 : index
    %216 = vector.load %arg5[%c2_167, %c7_168, %c0_169] : memref<3x16x128xf32, #tpu.memory_space<vmem>>, vector<1x6x128xf32>
    %217 = vector.shape_cast %216 : vector<1x6x128xf32> to vector<6x128xf32>
    %cst_170 = arith.constant 0.109360687 : f32
    %218 = vector.broadcast %cst_170 : f32 to vector<6x128xf32>
    %219 = arith.mulf %218, %217 : vector<6x128xf32>
    %220 = arith.addf %195, %219 : vector<6x128xf32>
    %c0_171 = arith.constant 0 : index
    %c8 = arith.constant 8 : index
    %c0_172 = arith.constant 0 : index
    %221 = vector.load %arg2[%c0_171, %c8, %c0_172] : memref<1x16x128xf32, #tpu.memory_space<vmem>>, vector<1x6x128xf32>
    %222 = vector.shape_cast %221 : vector<1x6x128xf32> to vector<6x128xf32>
    %c0_173 = arith.constant 0 : index
    %c8_174 = arith.constant 8 : index
    %c0_175 = arith.constant 0 : index
    %223 = vector.load %arg3[%c0_173, %c8_174, %c0_175] : memref<1x16x128xf32, #tpu.memory_space<vmem>>, vector<1x6x128xf32>
    %224 = vector.shape_cast %223 : vector<1x6x128xf32> to vector<6x128xf32>
    %cst_176 = arith.constant 0.0360007733 : f32
    %225 = vector.broadcast %cst_176 : f32 to vector<6x128xf32>
    %226 = arith.mulf %225, %222 : vector<6x128xf32>
    %227 = arith.addf %202, %226 : vector<6x128xf32>
    %cst_177 = arith.constant 0.0360007733 : f32
    %228 = vector.broadcast %cst_177 : f32 to vector<6x128xf32>
    %229 = arith.mulf %228, %224 : vector<6x128xf32>
    %230 = arith.addf %205, %229 : vector<6x128xf32>
    %c0_178 = arith.constant 0 : index
    %c8_179 = arith.constant 8 : index
    %c0_180 = arith.constant 0 : index
    %231 = vector.load %arg5[%c0_178, %c8_179, %c0_180] : memref<3x16x128xf32, #tpu.memory_space<vmem>>, vector<1x6x128xf32>
    %232 = vector.shape_cast %231 : vector<1x6x128xf32> to vector<6x128xf32>
    %cst_181 = arith.constant 0.0360007733 : f32
    %233 = vector.broadcast %cst_181 : f32 to vector<6x128xf32>
    %234 = arith.mulf %233, %232 : vector<6x128xf32>
    %235 = arith.addf %210, %234 : vector<6x128xf32>
    %c1_182 = arith.constant 1 : index
    %c8_183 = arith.constant 8 : index
    %c0_184 = arith.constant 0 : index
    %236 = vector.load %arg5[%c1_182, %c8_183, %c0_184] : memref<3x16x128xf32, #tpu.memory_space<vmem>>, vector<1x6x128xf32>
    %237 = vector.shape_cast %236 : vector<1x6x128xf32> to vector<6x128xf32>
    %cst_185 = arith.constant 0.0360007733 : f32
    %238 = vector.broadcast %cst_185 : f32 to vector<6x128xf32>
    %239 = arith.mulf %238, %237 : vector<6x128xf32>
    %240 = arith.addf %215, %239 : vector<6x128xf32>
    %c2_186 = arith.constant 2 : index
    %c8_187 = arith.constant 8 : index
    %c0_188 = arith.constant 0 : index
    %241 = vector.load %arg5[%c2_186, %c8_187, %c0_188] : memref<3x16x128xf32, #tpu.memory_space<vmem>>, vector<1x6x128xf32>
    %242 = vector.shape_cast %241 : vector<1x6x128xf32> to vector<6x128xf32>
    %cst_189 = arith.constant 0.0360007733 : f32
    %243 = vector.broadcast %cst_189 : f32 to vector<6x128xf32>
    %244 = arith.mulf %243, %242 : vector<6x128xf32>
    %245 = arith.addf %220, %244 : vector<6x128xf32>
    %c0_190 = arith.constant 0 : index
    %c9 = arith.constant 9 : index
    %c0_191 = arith.constant 0 : index
    %246 = vector.load %arg2[%c0_190, %c9, %c0_191] : memref<1x16x128xf32, #tpu.memory_space<vmem>>, vector<1x6x128xf32>
    %247 = vector.shape_cast %246 : vector<1x6x128xf32> to vector<6x128xf32>
    %c0_192 = arith.constant 0 : index
    %c9_193 = arith.constant 9 : index
    %c0_194 = arith.constant 0 : index
    %248 = vector.load %arg3[%c0_192, %c9_193, %c0_194] : memref<1x16x128xf32, #tpu.memory_space<vmem>>, vector<1x6x128xf32>
    %249 = vector.shape_cast %248 : vector<1x6x128xf32> to vector<6x128xf32>
    %cst_195 = arith.constant 0.00759875821 : f32
    %250 = vector.broadcast %cst_195 : f32 to vector<6x128xf32>
    %251 = arith.mulf %250, %247 : vector<6x128xf32>
    %252 = arith.addf %227, %251 : vector<6x128xf32>
    %cst_196 = arith.constant 0.00759875821 : f32
    %253 = vector.broadcast %cst_196 : f32 to vector<6x128xf32>
    %254 = arith.mulf %253, %249 : vector<6x128xf32>
    %255 = arith.addf %230, %254 : vector<6x128xf32>
    %c0_197 = arith.constant 0 : index
    %c9_198 = arith.constant 9 : index
    %c0_199 = arith.constant 0 : index
    %256 = vector.load %arg5[%c0_197, %c9_198, %c0_199] : memref<3x16x128xf32, #tpu.memory_space<vmem>>, vector<1x6x128xf32>
    %257 = vector.shape_cast %256 : vector<1x6x128xf32> to vector<6x128xf32>
    %cst_200 = arith.constant 0.00759875821 : f32
    %258 = vector.broadcast %cst_200 : f32 to vector<6x128xf32>
    %259 = arith.mulf %258, %257 : vector<6x128xf32>
    %260 = arith.addf %235, %259 : vector<6x128xf32>
    %c1_201 = arith.constant 1 : index
    %c9_202 = arith.constant 9 : index
    %c0_203 = arith.constant 0 : index
    %261 = vector.load %arg5[%c1_201, %c9_202, %c0_203] : memref<3x16x128xf32, #tpu.memory_space<vmem>>, vector<1x6x128xf32>
    %262 = vector.shape_cast %261 : vector<1x6x128xf32> to vector<6x128xf32>
    %cst_204 = arith.constant 0.00759875821 : f32
    %263 = vector.broadcast %cst_204 : f32 to vector<6x128xf32>
    %264 = arith.mulf %263, %262 : vector<6x128xf32>
    %265 = arith.addf %240, %264 : vector<6x128xf32>
    %c2_205 = arith.constant 2 : index
    %c9_206 = arith.constant 9 : index
    %c0_207 = arith.constant 0 : index
    %266 = vector.load %arg5[%c2_205, %c9_206, %c0_207] : memref<3x16x128xf32, #tpu.memory_space<vmem>>, vector<1x6x128xf32>
    %267 = vector.shape_cast %266 : vector<1x6x128xf32> to vector<6x128xf32>
    %cst_208 = arith.constant 0.00759875821 : f32
    %268 = vector.broadcast %cst_208 : f32 to vector<6x128xf32>
    %269 = arith.mulf %268, %267 : vector<6x128xf32>
    %270 = arith.addf %245, %269 : vector<6x128xf32>
    %c0_209 = arith.constant 0 : index
    %c10 = arith.constant 10 : index
    %c0_210 = arith.constant 0 : index
    %271 = vector.load %arg2[%c0_209, %c10, %c0_210] : memref<1x16x128xf32, #tpu.memory_space<vmem>>, vector<1x6x128xf32>
    %272 = vector.shape_cast %271 : vector<1x6x128xf32> to vector<6x128xf32>
    %c0_211 = arith.constant 0 : index
    %c10_212 = arith.constant 10 : index
    %c0_213 = arith.constant 0 : index
    %273 = vector.load %arg3[%c0_211, %c10_212, %c0_213] : memref<1x16x128xf32, #tpu.memory_space<vmem>>, vector<1x6x128xf32>
    %274 = vector.shape_cast %273 : vector<1x6x128xf32> to vector<6x128xf32>
    %cst_214 = arith.constant 0.00102838012 : f32
    %275 = vector.broadcast %cst_214 : f32 to vector<6x128xf32>
    %276 = arith.mulf %275, %272 : vector<6x128xf32>
    %277 = arith.addf %252, %276 : vector<6x128xf32>
    %cst_215 = arith.constant 0.00102838012 : f32
    %278 = vector.broadcast %cst_215 : f32 to vector<6x128xf32>
    %279 = arith.mulf %278, %274 : vector<6x128xf32>
    %280 = arith.addf %255, %279 : vector<6x128xf32>
    %c0_216 = arith.constant 0 : index
    %c10_217 = arith.constant 10 : index
    %c0_218 = arith.constant 0 : index
    %281 = vector.load %arg5[%c0_216, %c10_217, %c0_218] : memref<3x16x128xf32, #tpu.memory_space<vmem>>, vector<1x6x128xf32>
    %282 = vector.shape_cast %281 : vector<1x6x128xf32> to vector<6x128xf32>
    %cst_219 = arith.constant 0.00102838012 : f32
    %283 = vector.broadcast %cst_219 : f32 to vector<6x128xf32>
    %284 = arith.mulf %283, %282 : vector<6x128xf32>
    %285 = arith.addf %260, %284 : vector<6x128xf32>
    %c1_220 = arith.constant 1 : index
    %c10_221 = arith.constant 10 : index
    %c0_222 = arith.constant 0 : index
    %286 = vector.load %arg5[%c1_220, %c10_221, %c0_222] : memref<3x16x128xf32, #tpu.memory_space<vmem>>, vector<1x6x128xf32>
    %287 = vector.shape_cast %286 : vector<1x6x128xf32> to vector<6x128xf32>
    %cst_223 = arith.constant 0.00102838012 : f32
    %288 = vector.broadcast %cst_223 : f32 to vector<6x128xf32>
    %289 = arith.mulf %288, %287 : vector<6x128xf32>
    %290 = arith.addf %265, %289 : vector<6x128xf32>
    %c2_224 = arith.constant 2 : index
    %c10_225 = arith.constant 10 : index
    %c0_226 = arith.constant 0 : index
    %291 = vector.load %arg5[%c2_224, %c10_225, %c0_226] : memref<3x16x128xf32, #tpu.memory_space<vmem>>, vector<1x6x128xf32>
    %292 = vector.shape_cast %291 : vector<1x6x128xf32> to vector<6x128xf32>
    %cst_227 = arith.constant 0.00102838012 : f32
    %293 = vector.broadcast %cst_227 : f32 to vector<6x128xf32>
    %294 = arith.mulf %293, %292 : vector<6x128xf32>
    %295 = arith.addf %270, %294 : vector<6x128xf32>
    %cst_228 = arith.constant 0.000000e+00 : f32
    %296 = vector.broadcast %cst_228 : f32 to vector<6x54xf32>
    %cst_229 = arith.constant 0.000000e+00 : f32
    %297 = vector.broadcast %cst_229 : f32 to vector<6x54xf32>
    %cst_230 = arith.constant 0.000000e+00 : f32
    %298 = vector.broadcast %cst_230 : f32 to vector<6x54xf32>
    %cst_231 = arith.constant 0.000000e+00 : f32
    %299 = vector.broadcast %cst_231 : f32 to vector<6x54xf32>
    %cst_232 = arith.constant 0.000000e+00 : f32
    %300 = vector.broadcast %cst_232 : f32 to vector<6x54xf32>
    %301 = vector.extract_strided_slice %277 {offsets = [0, 0], sizes = [6, 54], strides = [1, 1]} : vector<6x128xf32> to vector<6x54xf32>
    %cst_233 = arith.constant 0.00102838012 : f32
    %302 = vector.broadcast %cst_233 : f32 to vector<6x54xf32>
    %303 = arith.mulf %302, %301 : vector<6x54xf32>
    %304 = arith.addf %296, %303 : vector<6x54xf32>
    %305 = vector.extract_strided_slice %280 {offsets = [0, 0], sizes = [6, 54], strides = [1, 1]} : vector<6x128xf32> to vector<6x54xf32>
    %cst_234 = arith.constant 0.00102838012 : f32
    %306 = vector.broadcast %cst_234 : f32 to vector<6x54xf32>
    %307 = arith.mulf %306, %305 : vector<6x54xf32>
    %308 = arith.addf %297, %307 : vector<6x54xf32>
    %309 = vector.extract_strided_slice %285 {offsets = [0, 0], sizes = [6, 54], strides = [1, 1]} : vector<6x128xf32> to vector<6x54xf32>
    %cst_235 = arith.constant 0.00102838012 : f32
    %310 = vector.broadcast %cst_235 : f32 to vector<6x54xf32>
    %311 = arith.mulf %310, %309 : vector<6x54xf32>
    %312 = arith.addf %298, %311 : vector<6x54xf32>
    %313 = vector.extract_strided_slice %290 {offsets = [0, 0], sizes = [6, 54], strides = [1, 1]} : vector<6x128xf32> to vector<6x54xf32>
    %cst_236 = arith.constant 0.00102838012 : f32
    %314 = vector.broadcast %cst_236 : f32 to vector<6x54xf32>
    %315 = arith.mulf %314, %313 : vector<6x54xf32>
    %316 = arith.addf %299, %315 : vector<6x54xf32>
    %317 = vector.extract_strided_slice %295 {offsets = [0, 0], sizes = [6, 54], strides = [1, 1]} : vector<6x128xf32> to vector<6x54xf32>
    %cst_237 = arith.constant 0.00102838012 : f32
    %318 = vector.broadcast %cst_237 : f32 to vector<6x54xf32>
    %319 = arith.mulf %318, %317 : vector<6x54xf32>
    %320 = arith.addf %300, %319 : vector<6x54xf32>
    %321 = vector.extract_strided_slice %277 {offsets = [0, 1], sizes = [6, 54], strides = [1, 1]} : vector<6x128xf32> to vector<6x54xf32>
    %cst_238 = arith.constant 0.00759875821 : f32
    %322 = vector.broadcast %cst_238 : f32 to vector<6x54xf32>
    %323 = arith.mulf %322, %321 : vector<6x54xf32>
    %324 = arith.addf %304, %323 : vector<6x54xf32>
    %325 = vector.extract_strided_slice %280 {offsets = [0, 1], sizes = [6, 54], strides = [1, 1]} : vector<6x128xf32> to vector<6x54xf32>
    %cst_239 = arith.constant 0.00759875821 : f32
    %326 = vector.broadcast %cst_239 : f32 to vector<6x54xf32>
    %327 = arith.mulf %326, %325 : vector<6x54xf32>
    %328 = arith.addf %308, %327 : vector<6x54xf32>
    %329 = vector.extract_strided_slice %285 {offsets = [0, 1], sizes = [6, 54], strides = [1, 1]} : vector<6x128xf32> to vector<6x54xf32>
    %cst_240 = arith.constant 0.00759875821 : f32
    %330 = vector.broadcast %cst_240 : f32 to vector<6x54xf32>
    %331 = arith.mulf %330, %329 : vector<6x54xf32>
    %332 = arith.addf %312, %331 : vector<6x54xf32>
    %333 = vector.extract_strided_slice %290 {offsets = [0, 1], sizes = [6, 54], strides = [1, 1]} : vector<6x128xf32> to vector<6x54xf32>
    %cst_241 = arith.constant 0.00759875821 : f32
    %334 = vector.broadcast %cst_241 : f32 to vector<6x54xf32>
    %335 = arith.mulf %334, %333 : vector<6x54xf32>
    %336 = arith.addf %316, %335 : vector<6x54xf32>
    %337 = vector.extract_strided_slice %295 {offsets = [0, 1], sizes = [6, 54], strides = [1, 1]} : vector<6x128xf32> to vector<6x54xf32>
    %cst_242 = arith.constant 0.00759875821 : f32
    %338 = vector.broadcast %cst_242 : f32 to vector<6x54xf32>
    %339 = arith.mulf %338, %337 : vector<6x54xf32>
    %340 = arith.addf %320, %339 : vector<6x54xf32>
    %341 = vector.extract_strided_slice %277 {offsets = [0, 2], sizes = [6, 54], strides = [1, 1]} : vector<6x128xf32> to vector<6x54xf32>
    %cst_243 = arith.constant 0.0360007733 : f32
    %342 = vector.broadcast %cst_243 : f32 to vector<6x54xf32>
    %343 = arith.mulf %342, %341 : vector<6x54xf32>
    %344 = arith.addf %324, %343 : vector<6x54xf32>
    %345 = vector.extract_strided_slice %280 {offsets = [0, 2], sizes = [6, 54], strides = [1, 1]} : vector<6x128xf32> to vector<6x54xf32>
    %cst_244 = arith.constant 0.0360007733 : f32
    %346 = vector.broadcast %cst_244 : f32 to vector<6x54xf32>
    %347 = arith.mulf %346, %345 : vector<6x54xf32>
    %348 = arith.addf %328, %347 : vector<6x54xf32>
    %349 = vector.extract_strided_slice %285 {offsets = [0, 2], sizes = [6, 54], strides = [1, 1]} : vector<6x128xf32> to vector<6x54xf32>
    %cst_245 = arith.constant 0.0360007733 : f32
    %350 = vector.broadcast %cst_245 : f32 to vector<6x54xf32>
    %351 = arith.mulf %350, %349 : vector<6x54xf32>
    %352 = arith.addf %332, %351 : vector<6x54xf32>
    %353 = vector.extract_strided_slice %290 {offsets = [0, 2], sizes = [6, 54], strides = [1, 1]} : vector<6x128xf32> to vector<6x54xf32>
    %cst_246 = arith.constant 0.0360007733 : f32
    %354 = vector.broadcast %cst_246 : f32 to vector<6x54xf32>
    %355 = arith.mulf %354, %353 : vector<6x54xf32>
    %356 = arith.addf %336, %355 : vector<6x54xf32>
    %357 = vector.extract_strided_slice %295 {offsets = [0, 2], sizes = [6, 54], strides = [1, 1]} : vector<6x128xf32> to vector<6x54xf32>
    %cst_247 = arith.constant 0.0360007733 : f32
    %358 = vector.broadcast %cst_247 : f32 to vector<6x54xf32>
    %359 = arith.mulf %358, %357 : vector<6x54xf32>
    %360 = arith.addf %340, %359 : vector<6x54xf32>
    %361 = vector.extract_strided_slice %277 {offsets = [0, 3], sizes = [6, 54], strides = [1, 1]} : vector<6x128xf32> to vector<6x54xf32>
    %cst_248 = arith.constant 0.109360687 : f32
    %362 = vector.broadcast %cst_248 : f32 to vector<6x54xf32>
    %363 = arith.mulf %362, %361 : vector<6x54xf32>
    %364 = arith.addf %344, %363 : vector<6x54xf32>
    %365 = vector.extract_strided_slice %280 {offsets = [0, 3], sizes = [6, 54], strides = [1, 1]} : vector<6x128xf32> to vector<6x54xf32>
    %cst_249 = arith.constant 0.109360687 : f32
    %366 = vector.broadcast %cst_249 : f32 to vector<6x54xf32>
    %367 = arith.mulf %366, %365 : vector<6x54xf32>
    %368 = arith.addf %348, %367 : vector<6x54xf32>
    %369 = vector.extract_strided_slice %285 {offsets = [0, 3], sizes = [6, 54], strides = [1, 1]} : vector<6x128xf32> to vector<6x54xf32>
    %cst_250 = arith.constant 0.109360687 : f32
    %370 = vector.broadcast %cst_250 : f32 to vector<6x54xf32>
    %371 = arith.mulf %370, %369 : vector<6x54xf32>
    %372 = arith.addf %352, %371 : vector<6x54xf32>
    %373 = vector.extract_strided_slice %290 {offsets = [0, 3], sizes = [6, 54], strides = [1, 1]} : vector<6x128xf32> to vector<6x54xf32>
    %cst_251 = arith.constant 0.109360687 : f32
    %374 = vector.broadcast %cst_251 : f32 to vector<6x54xf32>
    %375 = arith.mulf %374, %373 : vector<6x54xf32>
    %376 = arith.addf %356, %375 : vector<6x54xf32>
    %377 = vector.extract_strided_slice %295 {offsets = [0, 3], sizes = [6, 54], strides = [1, 1]} : vector<6x128xf32> to vector<6x54xf32>
    %cst_252 = arith.constant 0.109360687 : f32
    %378 = vector.broadcast %cst_252 : f32 to vector<6x54xf32>
    %379 = arith.mulf %378, %377 : vector<6x54xf32>
    %380 = arith.addf %360, %379 : vector<6x54xf32>
    %381 = vector.extract_strided_slice %277 {offsets = [0, 4], sizes = [6, 54], strides = [1, 1]} : vector<6x128xf32> to vector<6x54xf32>
    %cst_253 = arith.constant 0.213005543 : f32
    %382 = vector.broadcast %cst_253 : f32 to vector<6x54xf32>
    %383 = arith.mulf %382, %381 : vector<6x54xf32>
    %384 = arith.addf %364, %383 : vector<6x54xf32>
    %385 = vector.extract_strided_slice %280 {offsets = [0, 4], sizes = [6, 54], strides = [1, 1]} : vector<6x128xf32> to vector<6x54xf32>
    %cst_254 = arith.constant 0.213005543 : f32
    %386 = vector.broadcast %cst_254 : f32 to vector<6x54xf32>
    %387 = arith.mulf %386, %385 : vector<6x54xf32>
    %388 = arith.addf %368, %387 : vector<6x54xf32>
    %389 = vector.extract_strided_slice %285 {offsets = [0, 4], sizes = [6, 54], strides = [1, 1]} : vector<6x128xf32> to vector<6x54xf32>
    %cst_255 = arith.constant 0.213005543 : f32
    %390 = vector.broadcast %cst_255 : f32 to vector<6x54xf32>
    %391 = arith.mulf %390, %389 : vector<6x54xf32>
    %392 = arith.addf %372, %391 : vector<6x54xf32>
    %393 = vector.extract_strided_slice %290 {offsets = [0, 4], sizes = [6, 54], strides = [1, 1]} : vector<6x128xf32> to vector<6x54xf32>
    %cst_256 = arith.constant 0.213005543 : f32
    %394 = vector.broadcast %cst_256 : f32 to vector<6x54xf32>
    %395 = arith.mulf %394, %393 : vector<6x54xf32>
    %396 = arith.addf %376, %395 : vector<6x54xf32>
    %397 = vector.extract_strided_slice %295 {offsets = [0, 4], sizes = [6, 54], strides = [1, 1]} : vector<6x128xf32> to vector<6x54xf32>
    %cst_257 = arith.constant 0.213005543 : f32
    %398 = vector.broadcast %cst_257 : f32 to vector<6x54xf32>
    %399 = arith.mulf %398, %397 : vector<6x54xf32>
    %400 = arith.addf %380, %399 : vector<6x54xf32>
    %401 = vector.extract_strided_slice %277 {offsets = [0, 5], sizes = [6, 54], strides = [1, 1]} : vector<6x128xf32> to vector<6x54xf32>
    %cst_258 = arith.constant 0.266011715 : f32
    %402 = vector.broadcast %cst_258 : f32 to vector<6x54xf32>
    %403 = arith.mulf %402, %401 : vector<6x54xf32>
    %404 = arith.addf %384, %403 : vector<6x54xf32>
    %405 = vector.extract_strided_slice %280 {offsets = [0, 5], sizes = [6, 54], strides = [1, 1]} : vector<6x128xf32> to vector<6x54xf32>
    %cst_259 = arith.constant 0.266011715 : f32
    %406 = vector.broadcast %cst_259 : f32 to vector<6x54xf32>
    %407 = arith.mulf %406, %405 : vector<6x54xf32>
    %408 = arith.addf %388, %407 : vector<6x54xf32>
    %409 = vector.extract_strided_slice %285 {offsets = [0, 5], sizes = [6, 54], strides = [1, 1]} : vector<6x128xf32> to vector<6x54xf32>
    %cst_260 = arith.constant 0.266011715 : f32
    %410 = vector.broadcast %cst_260 : f32 to vector<6x54xf32>
    %411 = arith.mulf %410, %409 : vector<6x54xf32>
    %412 = arith.addf %392, %411 : vector<6x54xf32>
    %413 = vector.extract_strided_slice %290 {offsets = [0, 5], sizes = [6, 54], strides = [1, 1]} : vector<6x128xf32> to vector<6x54xf32>
    %cst_261 = arith.constant 0.266011715 : f32
    %414 = vector.broadcast %cst_261 : f32 to vector<6x54xf32>
    %415 = arith.mulf %414, %413 : vector<6x54xf32>
    %416 = arith.addf %396, %415 : vector<6x54xf32>
    %417 = vector.extract_strided_slice %295 {offsets = [0, 5], sizes = [6, 54], strides = [1, 1]} : vector<6x128xf32> to vector<6x54xf32>
    %cst_262 = arith.constant 0.266011715 : f32
    %418 = vector.broadcast %cst_262 : f32 to vector<6x54xf32>
    %419 = arith.mulf %418, %417 : vector<6x54xf32>
    %420 = arith.addf %400, %419 : vector<6x54xf32>
    %421 = vector.extract_strided_slice %277 {offsets = [0, 6], sizes = [6, 54], strides = [1, 1]} : vector<6x128xf32> to vector<6x54xf32>
    %cst_263 = arith.constant 0.213005543 : f32
    %422 = vector.broadcast %cst_263 : f32 to vector<6x54xf32>
    %423 = arith.mulf %422, %421 : vector<6x54xf32>
    %424 = arith.addf %404, %423 : vector<6x54xf32>
    %425 = vector.extract_strided_slice %280 {offsets = [0, 6], sizes = [6, 54], strides = [1, 1]} : vector<6x128xf32> to vector<6x54xf32>
    %cst_264 = arith.constant 0.213005543 : f32
    %426 = vector.broadcast %cst_264 : f32 to vector<6x54xf32>
    %427 = arith.mulf %426, %425 : vector<6x54xf32>
    %428 = arith.addf %408, %427 : vector<6x54xf32>
    %429 = vector.extract_strided_slice %285 {offsets = [0, 6], sizes = [6, 54], strides = [1, 1]} : vector<6x128xf32> to vector<6x54xf32>
    %cst_265 = arith.constant 0.213005543 : f32
    %430 = vector.broadcast %cst_265 : f32 to vector<6x54xf32>
    %431 = arith.mulf %430, %429 : vector<6x54xf32>
    %432 = arith.addf %412, %431 : vector<6x54xf32>
    %433 = vector.extract_strided_slice %290 {offsets = [0, 6], sizes = [6, 54], strides = [1, 1]} : vector<6x128xf32> to vector<6x54xf32>
    %cst_266 = arith.constant 0.213005543 : f32
    %434 = vector.broadcast %cst_266 : f32 to vector<6x54xf32>
    %435 = arith.mulf %434, %433 : vector<6x54xf32>
    %436 = arith.addf %416, %435 : vector<6x54xf32>
    %437 = vector.extract_strided_slice %295 {offsets = [0, 6], sizes = [6, 54], strides = [1, 1]} : vector<6x128xf32> to vector<6x54xf32>
    %cst_267 = arith.constant 0.213005543 : f32
    %438 = vector.broadcast %cst_267 : f32 to vector<6x54xf32>
    %439 = arith.mulf %438, %437 : vector<6x54xf32>
    %440 = arith.addf %420, %439 : vector<6x54xf32>
    %441 = vector.extract_strided_slice %277 {offsets = [0, 7], sizes = [6, 54], strides = [1, 1]} : vector<6x128xf32> to vector<6x54xf32>
    %cst_268 = arith.constant 0.109360687 : f32
    %442 = vector.broadcast %cst_268 : f32 to vector<6x54xf32>
    %443 = arith.mulf %442, %441 : vector<6x54xf32>
    %444 = arith.addf %424, %443 : vector<6x54xf32>
    %445 = vector.extract_strided_slice %280 {offsets = [0, 7], sizes = [6, 54], strides = [1, 1]} : vector<6x128xf32> to vector<6x54xf32>
    %cst_269 = arith.constant 0.109360687 : f32
    %446 = vector.broadcast %cst_269 : f32 to vector<6x54xf32>
    %447 = arith.mulf %446, %445 : vector<6x54xf32>
    %448 = arith.addf %428, %447 : vector<6x54xf32>
    %449 = vector.extract_strided_slice %285 {offsets = [0, 7], sizes = [6, 54], strides = [1, 1]} : vector<6x128xf32> to vector<6x54xf32>
    %cst_270 = arith.constant 0.109360687 : f32
    %450 = vector.broadcast %cst_270 : f32 to vector<6x54xf32>
    %451 = arith.mulf %450, %449 : vector<6x54xf32>
    %452 = arith.addf %432, %451 : vector<6x54xf32>
    %453 = vector.extract_strided_slice %290 {offsets = [0, 7], sizes = [6, 54], strides = [1, 1]} : vector<6x128xf32> to vector<6x54xf32>
    %cst_271 = arith.constant 0.109360687 : f32
    %454 = vector.broadcast %cst_271 : f32 to vector<6x54xf32>
    %455 = arith.mulf %454, %453 : vector<6x54xf32>
    %456 = arith.addf %436, %455 : vector<6x54xf32>
    %457 = vector.extract_strided_slice %295 {offsets = [0, 7], sizes = [6, 54], strides = [1, 1]} : vector<6x128xf32> to vector<6x54xf32>
    %cst_272 = arith.constant 0.109360687 : f32
    %458 = vector.broadcast %cst_272 : f32 to vector<6x54xf32>
    %459 = arith.mulf %458, %457 : vector<6x54xf32>
    %460 = arith.addf %440, %459 : vector<6x54xf32>
    %461 = vector.extract_strided_slice %277 {offsets = [0, 8], sizes = [6, 54], strides = [1, 1]} : vector<6x128xf32> to vector<6x54xf32>
    %cst_273 = arith.constant 0.0360007733 : f32
    %462 = vector.broadcast %cst_273 : f32 to vector<6x54xf32>
    %463 = arith.mulf %462, %461 : vector<6x54xf32>
    %464 = arith.addf %444, %463 : vector<6x54xf32>
    %465 = vector.extract_strided_slice %280 {offsets = [0, 8], sizes = [6, 54], strides = [1, 1]} : vector<6x128xf32> to vector<6x54xf32>
    %cst_274 = arith.constant 0.0360007733 : f32
    %466 = vector.broadcast %cst_274 : f32 to vector<6x54xf32>
    %467 = arith.mulf %466, %465 : vector<6x54xf32>
    %468 = arith.addf %448, %467 : vector<6x54xf32>
    %469 = vector.extract_strided_slice %285 {offsets = [0, 8], sizes = [6, 54], strides = [1, 1]} : vector<6x128xf32> to vector<6x54xf32>
    %cst_275 = arith.constant 0.0360007733 : f32
    %470 = vector.broadcast %cst_275 : f32 to vector<6x54xf32>
    %471 = arith.mulf %470, %469 : vector<6x54xf32>
    %472 = arith.addf %452, %471 : vector<6x54xf32>
    %473 = vector.extract_strided_slice %290 {offsets = [0, 8], sizes = [6, 54], strides = [1, 1]} : vector<6x128xf32> to vector<6x54xf32>
    %cst_276 = arith.constant 0.0360007733 : f32
    %474 = vector.broadcast %cst_276 : f32 to vector<6x54xf32>
    %475 = arith.mulf %474, %473 : vector<6x54xf32>
    %476 = arith.addf %456, %475 : vector<6x54xf32>
    %477 = vector.extract_strided_slice %295 {offsets = [0, 8], sizes = [6, 54], strides = [1, 1]} : vector<6x128xf32> to vector<6x54xf32>
    %cst_277 = arith.constant 0.0360007733 : f32
    %478 = vector.broadcast %cst_277 : f32 to vector<6x54xf32>
    %479 = arith.mulf %478, %477 : vector<6x54xf32>
    %480 = arith.addf %460, %479 : vector<6x54xf32>
    %481 = vector.extract_strided_slice %277 {offsets = [0, 9], sizes = [6, 54], strides = [1, 1]} : vector<6x128xf32> to vector<6x54xf32>
    %cst_278 = arith.constant 0.00759875821 : f32
    %482 = vector.broadcast %cst_278 : f32 to vector<6x54xf32>
    %483 = arith.mulf %482, %481 : vector<6x54xf32>
    %484 = arith.addf %464, %483 : vector<6x54xf32>
    %485 = vector.extract_strided_slice %280 {offsets = [0, 9], sizes = [6, 54], strides = [1, 1]} : vector<6x128xf32> to vector<6x54xf32>
    %cst_279 = arith.constant 0.00759875821 : f32
    %486 = vector.broadcast %cst_279 : f32 to vector<6x54xf32>
    %487 = arith.mulf %486, %485 : vector<6x54xf32>
    %488 = arith.addf %468, %487 : vector<6x54xf32>
    %489 = vector.extract_strided_slice %285 {offsets = [0, 9], sizes = [6, 54], strides = [1, 1]} : vector<6x128xf32> to vector<6x54xf32>
    %cst_280 = arith.constant 0.00759875821 : f32
    %490 = vector.broadcast %cst_280 : f32 to vector<6x54xf32>
    %491 = arith.mulf %490, %489 : vector<6x54xf32>
    %492 = arith.addf %472, %491 : vector<6x54xf32>
    %493 = vector.extract_strided_slice %290 {offsets = [0, 9], sizes = [6, 54], strides = [1, 1]} : vector<6x128xf32> to vector<6x54xf32>
    %cst_281 = arith.constant 0.00759875821 : f32
    %494 = vector.broadcast %cst_281 : f32 to vector<6x54xf32>
    %495 = arith.mulf %494, %493 : vector<6x54xf32>
    %496 = arith.addf %476, %495 : vector<6x54xf32>
    %497 = vector.extract_strided_slice %295 {offsets = [0, 9], sizes = [6, 54], strides = [1, 1]} : vector<6x128xf32> to vector<6x54xf32>
    %cst_282 = arith.constant 0.00759875821 : f32
    %498 = vector.broadcast %cst_282 : f32 to vector<6x54xf32>
    %499 = arith.mulf %498, %497 : vector<6x54xf32>
    %500 = arith.addf %480, %499 : vector<6x54xf32>
    %501 = vector.extract_strided_slice %277 {offsets = [0, 10], sizes = [6, 54], strides = [1, 1]} : vector<6x128xf32> to vector<6x54xf32>
    %cst_283 = arith.constant 0.00102838012 : f32
    %502 = vector.broadcast %cst_283 : f32 to vector<6x54xf32>
    %503 = arith.mulf %502, %501 : vector<6x54xf32>
    %504 = arith.addf %484, %503 : vector<6x54xf32>
    %505 = vector.extract_strided_slice %280 {offsets = [0, 10], sizes = [6, 54], strides = [1, 1]} : vector<6x128xf32> to vector<6x54xf32>
    %cst_284 = arith.constant 0.00102838012 : f32
    %506 = vector.broadcast %cst_284 : f32 to vector<6x54xf32>
    %507 = arith.mulf %506, %505 : vector<6x54xf32>
    %508 = arith.addf %488, %507 : vector<6x54xf32>
    %509 = vector.extract_strided_slice %285 {offsets = [0, 10], sizes = [6, 54], strides = [1, 1]} : vector<6x128xf32> to vector<6x54xf32>
    %cst_285 = arith.constant 0.00102838012 : f32
    %510 = vector.broadcast %cst_285 : f32 to vector<6x54xf32>
    %511 = arith.mulf %510, %509 : vector<6x54xf32>
    %512 = arith.addf %492, %511 : vector<6x54xf32>
    %513 = vector.extract_strided_slice %290 {offsets = [0, 10], sizes = [6, 54], strides = [1, 1]} : vector<6x128xf32> to vector<6x54xf32>
    %cst_286 = arith.constant 0.00102838012 : f32
    %514 = vector.broadcast %cst_286 : f32 to vector<6x54xf32>
    %515 = arith.mulf %514, %513 : vector<6x54xf32>
    %516 = arith.addf %496, %515 : vector<6x54xf32>
    %517 = vector.extract_strided_slice %295 {offsets = [0, 10], sizes = [6, 54], strides = [1, 1]} : vector<6x128xf32> to vector<6x54xf32>
    %cst_287 = arith.constant 0.00102838012 : f32
    %518 = vector.broadcast %cst_287 : f32 to vector<6x54xf32>
    %519 = arith.mulf %518, %517 : vector<6x54xf32>
    %520 = arith.addf %500, %519 : vector<6x54xf32>
    %c0_288 = arith.constant 0 : index
    %521 = memref.load %arg1[%c0_288] : memref<2xf32, #tpu.memory_space<smem>>
    %c1_289 = arith.constant 1 : index
    %522 = memref.load %arg1[%c1_289] : memref<2xf32, #tpu.memory_space<smem>>
    %523 = arith.mulf %504, %504 : vector<6x54xf32>
    %524 = arith.mulf %508, %508 : vector<6x54xf32>
    %525 = arith.mulf %504, %508 : vector<6x54xf32>
    %526 = arith.subf %512, %523 : vector<6x54xf32>
    %527 = arith.subf %516, %524 : vector<6x54xf32>
    %528 = arith.subf %520, %525 : vector<6x54xf32>
    %cst_290 = arith.constant 2.000000e+00 : f32
    %529 = vector.broadcast %cst_290 : f32 to vector<6x54xf32>
    %530 = arith.mulf %529, %528 : vector<6x54xf32>
    %531 = vector.broadcast %522 : f32 to vector<6x54xf32>
    %532 = arith.addf %530, %531 : vector<6x54xf32>
    %533 = arith.addf %526, %527 : vector<6x54xf32>
    %534 = vector.broadcast %522 : f32 to vector<6x54xf32>
    %535 = arith.addf %533, %534 : vector<6x54xf32>
    %cst_291 = arith.constant 2.000000e+00 : f32
    %536 = vector.broadcast %cst_291 : f32 to vector<6x54xf32>
    %537 = arith.mulf %536, %525 : vector<6x54xf32>
    %538 = vector.broadcast %521 : f32 to vector<6x54xf32>
    %539 = arith.addf %537, %538 : vector<6x54xf32>
    %540 = arith.mulf %539, %532 : vector<6x54xf32>
    %541 = arith.addf %523, %524 : vector<6x54xf32>
    %542 = vector.broadcast %521 : f32 to vector<6x54xf32>
    %543 = arith.addf %541, %542 : vector<6x54xf32>
    %544 = arith.mulf %543, %535 : vector<6x54xf32>
    %545 = tpu.reciprocal %544 {approx = true} : vector<6x54xf32> -> vector<6x54xf32>
    %546 = arith.mulf %540, %545 : vector<6x54xf32>
    %547 = vector.extract_strided_slice %546 {offsets = [0, 0], sizes = [6, 6], strides = [1, 1]} : vector<6x54xf32> to vector<6x6xf32>
    %548 = vector.shape_cast %547 : vector<6x6xf32> to vector<1x6x6xf32>
    %cst_292 = arith.constant dense<0.000000e+00> : vector<1xf32>
    %549 = vector.multi_reduction <add>, %548, %cst_292 [1, 2] : vector<1x6x6xf32> to vector<1xf32>
    %550 = vector.shape_cast %549 : vector<1xf32> to vector<1x1x1xf32>
    %551 = vector.extract %550[0, 0, 0] : f32 from vector<1x1x1xf32>
    %552 = vector.broadcast %551 : f32 to vector<1x1xf32>
    %553 = vector.extract_strided_slice %546 {offsets = [0, 16], sizes = [6, 6], strides = [1, 1]} : vector<6x54xf32> to vector<6x6xf32>
    %554 = vector.shape_cast %553 : vector<6x6xf32> to vector<1x6x6xf32>
    %cst_293 = arith.constant dense<0.000000e+00> : vector<1xf32>
    %555 = vector.multi_reduction <add>, %554, %cst_293 [1, 2] : vector<1x6x6xf32> to vector<1xf32>
    %556 = vector.shape_cast %555 : vector<1xf32> to vector<1x1x1xf32>
    %557 = vector.extract %556[0, 0, 0] : f32 from vector<1x1x1xf32>
    %558 = vector.broadcast %557 : f32 to vector<1x1xf32>
    %559 = arith.addf %552, %558 : vector<1x1xf32>
    %560 = vector.extract_strided_slice %546 {offsets = [0, 32], sizes = [6, 6], strides = [1, 1]} : vector<6x54xf32> to vector<6x6xf32>
    %561 = vector.shape_cast %560 : vector<6x6xf32> to vector<1x6x6xf32>
    %cst_294 = arith.constant dense<0.000000e+00> : vector<1xf32>
    %562 = vector.multi_reduction <add>, %561, %cst_294 [1, 2] : vector<1x6x6xf32> to vector<1xf32>
    %563 = vector.shape_cast %562 : vector<1xf32> to vector<1x1x1xf32>
    %564 = vector.extract %563[0, 0, 0] : f32 from vector<1x1x1xf32>
    %565 = vector.broadcast %564 : f32 to vector<1x1xf32>
    %566 = arith.addf %559, %565 : vector<1x1xf32>
    %567 = vector.extract_strided_slice %546 {offsets = [0, 48], sizes = [6, 6], strides = [1, 1]} : vector<6x54xf32> to vector<6x6xf32>
    %568 = vector.shape_cast %567 : vector<6x6xf32> to vector<1x6x6xf32>
    %cst_295 = arith.constant dense<0.000000e+00> : vector<1xf32>
    %569 = vector.multi_reduction <add>, %568, %cst_295 [1, 2] : vector<1x6x6xf32> to vector<1xf32>
    %570 = vector.shape_cast %569 : vector<1xf32> to vector<1x1x1xf32>
    %571 = vector.extract %570[0, 0, 0] : f32 from vector<1x1x1xf32>
    %572 = vector.broadcast %571 : f32 to vector<1x1xf32>
    %573 = arith.addf %566, %572 : vector<1x1xf32>
    %c0_296 = arith.constant 0 : index
    %c0_297 = arith.constant 0 : index
    %c0_298 = arith.constant 0 : index
    %574 = vector.load %arg4[%c0_296, %c0_297, %c0_298] : memref<1x1x1xf32, #tpu.memory_space<vmem>>, vector<1x1x1xf32>
    %575 = vector.shape_cast %574 : vector<1x1x1xf32> to vector<1x1xf32>
    %576 = vector.shape_cast %573 : vector<1x1xf32> to vector<1x1x1xf32>
    tpu.vector_store %arg4[%c0_296, %c0_297, %c0_298], %576 {strides = array<i32>} : memref<1x1x1xf32, #tpu.memory_space<vmem>>, vector<1x1x1xf32>,
    return
  }
  func.func @transform_0(%arg0: i32) -> i32 {
    %c0_i32 = arith.constant 0 : i32
    %c0_i32_0 = arith.constant 0 : i32
    return %c0_i32 : i32
  }
  func.func @transform_1(%arg0: i32) -> (i32, i32, i32) {
    %c0_i32 = arith.constant 0 : i32
    %c0_i32_0 = arith.constant 0 : i32
    %c0_i32_1 = arith.constant 0 : i32
    return %arg0, %c0_i32, %c0_i32_0 : i32, i32, i32
  }
  func.func @transform_2(%arg0: i32) -> (i32, i32, i32) {
    %c0_i32 = arith.constant 0 : i32
    %c0_i32_0 = arith.constant 0 : i32
    %c0_i32_1 = arith.constant 0 : i32
    return %arg0, %c0_i32, %c0_i32_0 : i32, i32, i32
  }
  func.func @transform_3(%arg0: i32) -> (i32, i32, i32) {
    %c0_i32 = arith.constant 0 : i32
    %c0_i32_0 = arith.constant 0 : i32
    %c0_i32_1 = arith.constant 0 : i32
    return %arg0, %c0_i32, %c0_i32_0 : i32, i32, i32
  }
}

</mosaic_0001>

<bundles_post_ra>
// kernel: tpu_custom_call.1
= control target key start
LH: loop header
LB: loop body
LE: loop exit
PB: predicated region body
PF: predicated region fallthrough
CT: control target
= control target key end

     0   :  { %8 = vsyncpa [#allocation5], 0  ;;  %s1449_s0 = inlined_call_operand.hbm [shape: f32[2], index: 0, kind: input, shape index: {}]   ;;  %s1450_s1 = inlined_call_operand.hbm [shape: f32[2,16,128], index: 1, kind: input, shape index: {}]   ;;  %s1451_s2 = inlined_call_operand.hbm [shape: f32[2,16,128], index: 2, kind: input, shape index: {}]   ;;  %s1452_s3 = inlined_call_operand.vmem [shape: f32[2,1,1], index: 3, kind: output, shape index: {}]  }
   0x1   :  { %9 = vsyncpa [#allocation4], 0 }
   0x2   :  { %11 = vsyncpa [#allocation4 + $0x1], 0 }
   0x3   :  { %12 = vsyncpa [#allocation8], 0 }
   0x4   :  { %14 = vsyncpa [#allocation8 + $0x1], 0  ;;  %s1117_s12 = smov 0   ;;  %s1119_s13 = smov 0  }
   0x5   :  { %s1121_s14 = smov 0   ;;  %s1123_s15 = smov 0  }
   0x6 LB: > { %s1136_s16 = sadd.s32 4294967295, %s1077_s15   ;;  %s1139_s17 = sadd.s32 1, %s1077_s15   ;;  %s1077_s15 = sphi %s1123_s15, %s1464_s15   ;;  %s1073_s14 = sphi %s1121_s14, %s1463_s14   ;;  %s1069_s13 = sphi %s1119_s13, %s1462_s13   ;;  %s1065_s12 = sphi %s1117_s12, %s1461_s12  }
   0x7   : > { %s45_s18 = ssub.s32 %s1077_s15, %s1139_s17  ;;  %s48_s19 = sadd.s32 1, %s1073_s14 }
   0x8   : > { %p46_p0 = scmp.eq.s32.totalorder %s45_s18, 0  ;;  %p55_p1 = scmp.ne.s32.totalorder %s1073_s14, %s1069_s13 }
   0x9   : > { %p56_p2 = scmp.eq.s32.totalorder %s1077_s15, 0  ;;  %p61_p3 = scmp.ne.s32.totalorder %s1069_s13, %s1065_s12 }
   0xa   : > { %s1149_s20 = scalar_select %p46_p0, %s1073_s14, %s48_s19  }
   0xb   : > { %p57_p4 = por %p56_p2, %p55_p1  ;;  %p1453_p5 = scmp.eq.s32.totalorder %s1136_s16, 0 }
   0xc   : > { %p864_p6 = scmp.ge.s32.totalorder %s1077_s15, 1  ;;  %p124_p7 = scmp.lt.s32.totalorder %s1077_s15, 3 }
   0xd   : > { %p1156_p8 = por %p1453_p5, %p61_p3  ;;  %p910_p10 = scmp.lt.s32.totalorder %s1077_s15, 2 }
   0xe   : > { %p1160_p9 = pnand %p864_p6, %p124_p7  ;;  %s1168_s23 = sand.u32 1, %s1073_s14  }
   0xf   : > { %s1455_s21 = scalar_select %p1156_p8, 1, 0 }
  0x10   : > { %p898_p11 = pneg %p1160_p9  ;;  %p1170_p12 = pnand %p910_p10, %p57_p4 }
  0x11   : > { %s867_s25 = sshll.u32 %s1168_s23, 4  ;;  %s880_s26 = sshll.u32 %s1077_s15, 8 }
  0x12   : > { %p899_p13 = pnand %p898_p11, %p1453_p5  ;;  %s962_s29 = scalar_lea.hbm %s1449_s0, 16 }
  0x13   : > { %p963_p0 = scmp.ne.s32.totalorder %s1449_s0, %s962_s29  ;;  %p969_p4 = scmp.lt.u32.totalorder %s962_s29, %s1449_s0 }
  0x14   : > { %p964_p1 = pneg %p899_p13 }
  0x16   : > { %p965_p2 = pnand %p964_p1, %p963_p0 }
  0x18   : > { %p966_p3 = pneg %p965_p2 }
  0x1a   : > { %p971_p6 = pnand %p969_p4, %p966_p3 }
  0x1c   : > { %974 = shalt.err (!%p971_p6)
}
  0x1d   : > { %s1079_s7 = smov [#allocation3]   ;;  %s1195_s12 = scalar_lea.hbm %s1450_s1, %s880_s26 }
  0x1e   : > { %901 = dma.hbm_to_smem (!%p899_p13), %s1449_s0, 16, %s1079_s7, [#allocation5]  }
  0x1f   : > { %s150_s18 = scalar_lea.vmem [#allocation6], %s867_s25  ;;  %s147_s27 = scalar_lea.sflag [#allocation4], %s1168_s23 }
  0x20   : > { %s157_s19 = sshll.u32 %s150_s18, 4  ;;  %s975_s28 = scalar_lea.hbm %s1195_s12, 256  ;;  %s1199_s19 = int_to_ptr.vmem [resolvable:$true] %s157_s19 }
  0x21   : > { %p976_p7 = scmp.ne.s32.totalorder %s1195_s12, %s975_s28  ;;  %p977_p10 = pneg %p1170_p12 }
  0x22   : > { %s980_s4 = scalar_lea.hbm %s1450_s1, 512  ;;  %p981_p0 = scmp.lt.u32.totalorder %s1195_s12, %s1450_s1 }
  0x23   : > { %p978_p11 = pnand %p977_p10, %p976_p7  ;;  %p982_p1 = scmp.lt.u32.totalorder %s980_s4, %s975_s28 }
  0x24   : > { %p984_p3 = scmp.lt.u32.totalorder %s975_s28, %s1195_s12 }
  0x25   : > { %p979_p13 = pneg %p978_p11  ;;  %p983_p2 = por %p982_p1, %p981_p0 }
  0x27   : > { %p985_p4 = por %p984_p3, %p983_p2 }
  0x29   : > { %p986_p6 = pnand %p985_p4, %p979_p13 }
  0x2b   : > { %989 = shalt.err (!%p986_p6)
}
  0x2c   : > { %s990_s7 = scalar_lea.vmem %s1199_s19, 256  ;;  %s1080_s8 = smov [#allocation6]  }
  0x2d   : > { %p991_p7 = scmp.ne.s32.totalorder %s1199_s19, %s990_s7  ;;  %s995_s9 = sshll.u32 %s1080_s8, 4  ;;  %s996_s9 = int_to_ptr.vmem [resolvable:$false] %s995_s9 }
  0x2e   : > { %s997_s10 = scalar_lea.vmem %s996_s9, 512  ;;  %p998_p8 = scmp.lt.s32.totalorder %s1199_s19, %s996_s9 }
  0x2f   : > { %p993_p11 = pnand %p991_p7, %p977_p10  ;;  %p999_p0 = scmp.lt.s32.totalorder %s997_s10, %s990_s7 }
  0x31   : > { %p994_p5 = pneg %p993_p11  ;;  %p1000_p1 = por %p999_p0, %p998_p8 }
  0x33   : > { %p1001_p2 = pnand %p1000_p1, %p994_p5 }
  0x35   : > { %1004 = shalt.err (!%p1001_p2)
}
  0x36   : > { %s1081_s11 = smov 128   ;;  %s1082_s18 = smov 8  }
  0x37   : > { %905 = dma.hbm_to_vmem [thread:$0]  (!%p1170_p12), %s1195_s12, 256, %s1199_s19, %s147_s27, %s1081_s11, %s1081_s11, %s1082_s18  }
  0x38   : > { %s1237_s30 = scalar_lea.hbm %s1451_s2, %s880_s26  ;;  %s171_s4 = scalar_lea.vmem [#allocation7], %s867_s25 }
  0x39   : > { %s178_s5 = sshll.u32 %s171_s4, 4  ;;  %s168_s6 = scalar_lea.sflag [#allocation8], %s1168_s23  ;;  %s1241_s5 = int_to_ptr.vmem [resolvable:$true] %s178_s5 }
  0x3a   : > { %s1005_s7 = scalar_lea.hbm %s1237_s30, 256  ;;  %s1010_s26 = scalar_lea.hbm %s1451_s2, 512 }
  0x3b   : > { %p1006_p5 = scmp.ne.s32.totalorder %s1237_s30, %s1005_s7  ;;  %p1011_p3 = scmp.lt.u32.totalorder %s1237_s30, %s1451_s2 }
  0x3c   : > { %p1012_p4 = scmp.lt.u32.totalorder %s1010_s26, %s1005_s7  ;;  %p1014_p7 = scmp.lt.u32.totalorder %s1005_s7, %s1237_s30 }
  0x3d   : > { %p1008_p8 = pnand %p1006_p5, %p977_p10 }
  0x3e   : > { %p1013_p6 = por %p1012_p4, %p1011_p3 }
  0x3f   : > { %p1009_p13 = pneg %p1008_p8 }
  0x40   : > { %p1015_p11 = por %p1014_p7, %p1013_p6 }
  0x42   : > { %p1016_p0 = pnand %p1015_p11, %p1009_p13 }
  0x44   : > { %1019 = shalt.err (!%p1016_p0)
}
  0x45   : > { %s1020_s25 = scalar_lea.vmem %s1241_s5, 256  ;;  %s1083_s8 = smov [#allocation7]  }
  0x46   : > { %p1021_p1 = scmp.ne.s32.totalorder %s1241_s5, %s1020_s25  ;;  %s1025_s9 = sshll.u32 %s1083_s8, 4  ;;  %s1026_s9 = int_to_ptr.vmem [resolvable:$false] %s1025_s9 }
  0x47   : > { %s1027_s10 = scalar_lea.vmem %s1026_s9, 512  ;;  %p1028_p8 = scmp.lt.s32.totalorder %s1241_s5, %s1026_s9 }
  0x48   : > { %p1023_p2 = pnand %p1021_p1, %p977_p10  ;;  %p1029_p3 = scmp.lt.s32.totalorder %s1027_s10, %s1020_s25 }
  0x4a   : > { %p1024_p5 = pneg %p1023_p2  ;;  %p1030_p4 = por %p1029_p3, %p1028_p8 }
  0x4c   : > { %p1031_p6 = pnand %p1030_p4, %p1024_p5 }
  0x4e   : > { %1034 = shalt.err (!%p1031_p6)
}
  0x4f   : > { %908 = dma.hbm_to_vmem [thread:$0]  (!%p1170_p12), %s1237_s30, 256, %s1241_s5, %s168_s6, %s1081_s11, %s1081_s11, %s1082_s18  }
  0x50   : > { %190 = sbr.rel (%p1160_p9) target bundleno = 686 (0x2ae), region = 32  ;;  %p1458_p10 = scmp.eq.s32.totalorder (!%p1160_p9), %s1136_s16, 0 }
  0x57   : > { %1052 = dma.done.wait (%p1458_p10), [#allocation5], 16   ;;  %p1459_p13 = pmov %p1458_p10 }
  0x58   : > { %s196_s24 = sand.u32 1, %s1069_s13   ;;  %p1460_p7 = scmp.ne.s32.totalorder %s1455_s21, 0 }
  0x59   : > { %1054 = vsyncadd (%p1459_p13), [#allocation5], 4294967280  ;;  %s875_s28 = sshll.u32 %s196_s24, 4  ;;  %s197_s29 = scalar_lea.sflag [#allocation4], %s196_s24 }
  0x5a   : > { %s1279_s4 = scalar_lea.vmem [#allocation6], %s875_s28 }
  0x5b   : > { %1056 = dma.done.wait (%p1460_p7), %s197_s29, 256  }
  0x5c   : > { %1058 = vsyncadd (%p1460_p7), %s197_s29, 4294967040  ;;  %s206_s22 = scalar_lea.sflag [#allocation8], %s196_s24  ;;  %s1285_s23 = scalar_lea.vmem [#allocation7], %s875_s28 }
  0x5d   : > { %1060 = dma.done.wait (%p1460_p7), %s206_s22, 256  }
  0x5e   : > { %1062 = vsyncadd (%p1460_p7), %s206_s22, 4294967040 }
  0x5f   : > { %214 = sfence }
  0x60   : > { %v258_v0 = vld [vmem:[%s1285_s23] sm:$0x3f]  ;;  %v348_v11 = vld [vmem:[%s1285_s23 + $0x6] sm:$0x3f]  ;;  %s1084_s21 = smov 126   ;;  %s1085_s11 = smov 125  }
  0x61   : > { %v273_v1 = vld [vmem:[%s1285_s23 + $0x1] sm:$0x3f]  ;;  %v261_v3 = vmul.f32 0.0010283801, %v258_v0  ;;  %v351_v16 = vmul.f32 0.21300554, %v348_v11 }
  0x62   : > { %v288_v2 = vld [vmem:[%s1285_s23 + $0x2] sm:$0x3f]  ;;  %v276_v4 = vmul.f32 0.007598758, %v273_v1  ;;  %v378_v19 = vld [vmem:[%s1285_s23 + $0x8] sm:$0x3f] }
  0x63   : > { %v291_v5 = vmul.f32 0.036000773, %v288_v2  ;;  %v303_v6 = vld [vmem:[%s1285_s23 + $0x3] sm:$0x3f]  ;;  %v393_v28 = vld [vmem:[%s1285_s23 + $0x9] sm:$0x3f] }
  0x64   : > { %v318_v7 = vld [vmem:[%s1285_s23 + $0x4] sm:$0x3f]  ;;  %v277_v8 = vadd.f32 %v276_v4, %v261_v3  ;;  %v306_v9 = vmul.f32 0.10936069, %v303_v6  ;;  %v408_v31 = vld [vmem:[%s1285_s23 + $0xa] sm:$0x3f] }
  0x65   : > { %v333_v10 = vld [vmem:[%s1285_s23 + $0x5] sm:$0x3f]  ;;  %v321_v13 = vmul.f32 0.21300554, %v318_v7  ;;  %v381_v37 = vmul.f32 0.036000773, %v378_v19 }
  0x66   : > { %v292_v12 = vadd.f32 %v291_v5, %v277_v8  ;;  %v336_v14 = vmul.f32 0.26601171, %v333_v10  ;;  %v363_v17 = vld [vmem:[%s1285_s23 + $0x7] sm:$0x3f]  ;;  %v257_v18 = vld [vmem:[%s1279_s4] sm:$0x3f] }
  0x67   : > { %v259_v20 = vmul.f32 0.0010283801, %v257_v18  ;;  %v272_v21 = vld [vmem:[%s1279_s4 + $0x1] sm:$0x3f]  ;;  %v366_v27 = vmul.f32 0.10936069, %v363_v17 }
  0x68   : > { %v307_v15 = vadd.f32 %v306_v9, %v292_v12  ;;  %v287_v22 = vld [vmem:[%s1279_s4 + $0x2] sm:$0x3f]  ;;  %v274_v24 = vmul.f32 0.007598758, %v272_v21  ;;  %v396_v40 = vmul.f32 0.007598758, %v393_v28 }
  0x69   : > { %v289_v25 = vmul.f32 0.036000773, %v287_v22  ;;  %v302_v26 = vld [vmem:[%s1279_s4 + $0x3] sm:$0x3f]  ;;  %v411_v41 = vmul.f32 0.0010283801, %v408_v31 }
  0x6a   : > { %v322_v23 = vadd.f32 %v321_v13, %v307_v15  ;;  %v317_v29 = vld [vmem:[%s1279_s4 + $0x4] sm:$0x3f]  ;;  %v275_v32 = vadd.f32 %v274_v24, %v259_v20  ;;  %v304_v33 = vmul.f32 0.10936069, %v302_v26  ;;  %v407_v3 = vld [vmem:[%s1279_s4 + $0xa] sm:$0x3f] }
  0x6b   : > { %v332_v34 = vld [vmem:[%s1279_s4 + $0x5] sm:$0x3f]  ;;  %v319_v39 = vmul.f32 0.21300554, %v317_v29  ;;  %v409_v7 = vmul.f32 0.0010283801, %v407_v3 }
  0x6c   : > { %v337_v30 = vadd.f32 %v336_v14, %v322_v23  ;;  %v347_v35 = vld [vmem:[%s1279_s4 + $0x6] sm:$0x3f]  ;;  %v290_v38 = vadd.f32 %v289_v25, %v275_v32  ;;  %v334_v42 = vmul.f32 0.26601171, %v332_v34  ;;  %s1086_s18 = smov 127   ;;  %s1087_s30 = smov 124  }
  0x6d   : > { %v349_v45 = vmul.f32 0.21300554, %v347_v35  ;;  %v239_v46 = vld [vmem:[%s1279_s4] sm:$0xff]  ;;  %v240_v47 = vld [vmem:[%s1279_s4 + $0x8] sm:$0xff]  ;;  %s1088_s5 = smov 123   ;;  %s1089_s6 = smov 122  }
  0x6e   : > { %v352_v36 = vadd.f32 %v351_v16, %v337_v30  ;;  %v305_v44 = vadd.f32 %v304_v33, %v290_v38  ;;  %v241_v48 = vld [vmem:[%s1285_s23] sm:$0xff]  ;;  %v243_v50 = vmul.f32 %v239_v46, %v239_v46  ;;  %v244_v51 = vmul.f32 %v240_v47, %v240_v47  ;;  %v242_v52 = vld [vmem:[%s1285_s23 + $0x8] sm:$0xff]  ;;  %s1090_s7 = smov 121   ;;  %s1091_s15 = smov 120  }
  0x6f   : > { %v362_v49 = vld [vmem:[%s1279_s4 + $0x7] sm:$0x3f]  ;;  %v247_v53 = vmul.f32 %v241_v48, %v241_v48  ;;  %v252_v54 = vmul.f32 %v241_v48, %v239_v46  ;;  %v248_v57 = vmul.f32 %v242_v52, %v242_v52  ;;  %v253_v58 = vmul.f32 %v242_v52, %v240_v47  ;;  %s1092_s12 = smov 119   ;;  %s1093_s26 = smov 118  }
  0x70   : > { %v367_v43 = vadd.f32 %v366_v27, %v352_v36  ;;  %v320_v56 = vadd.f32 %v319_v39, %v305_v44  ;;  %v377_v59 = vld [vmem:[%s1279_s4 + $0x8] sm:$0x3f]  ;;  %245 = vst [vmem:[#allocation2] sm:$0xff] %v243_v50  ;;  %246 = vst [vmem:[#allocation2 + $0x8] sm:$0xff] %v244_v51  ;;  %v364_v62 = vmul.f32 0.10936069, %v362_v49 }
  0x71   : > { %250 = vst [vmem:[#allocation2 + $0x10] sm:$0xff] %v247_v53  ;;  %255 = vst [vmem:[#allocation2 + $0x20] sm:$0xff] %v252_v54  ;;  %v392_v63 = vld [vmem:[%s1279_s4 + $0x9] sm:$0x3f]  ;;  %v379_v2 = vmul.f32 0.036000773, %v377_v59 }
  0x72   : > { %v382_v55 = vadd.f32 %v381_v37, %v367_v43  ;;  %v335_v61 = vadd.f32 %v334_v42, %v320_v56  ;;  %251 = vst [vmem:[#allocation2 + $0x18] sm:$0xff] %v248_v57  ;;  %256 = vst [vmem:[#allocation2 + $0x28] sm:$0xff] %v253_v58  ;;  %v394_v6 = vmul.f32 0.007598758, %v392_v63  ;;  %s1425_s19 = sld [smem:[#allocation3]]  ;;  %s1427_s27 = sld [smem:[#allocation3 + $0x1]] }
  0x73   : > { %s1094_s25 = smov 96   ;;  %s1095_s8 = smov 112   ;;  %vm709_vm0 = vcmask 46080   ;;  %vm767_vm1 = vcmask 0  }
  0x74   : > { %v397_v60 = vadd.f32 %v396_v40, %v382_v55  ;;  %v350_v1 = vadd.f32 %v349_v45, %v335_v61  ;;  %s1096_s9 = smov 80   ;;  %p236_p9 = scmp.lt.s32.totalorder %s1136_s16, 1 }
  0x76   : > { %v1316_v0 = vadd.f32 %v411_v41, %v397_v60  ;;  %v365_v5 = vadd.f32 %v364_v62, %v350_v1  ;;  %s1466_s16 = smov (!%p236_p9, %s1136_s16), 1 }
  0x77   : > { %v263_v10 = vld [vmem:[#allocation2] sm:$0x3f]  ;;  %v353_v26 = vld [vmem:[#allocation2 + $0x6] sm:$0x3f]  ;;  %s238_s23 = scalar_lea.vmem %s1452_s3, %s1466_s16 }
  0x78   : > { %v1320_v4 = vmul.f32 0.036000773, %v1316_v0  ;;  %v1323_v8 = vmul.f32 0.10936069, %v1316_v0  ;;  %v380_v9 = vadd.f32 %v379_v2, %v365_v5  ;;  %v278_v11 = vld [vmem:[#allocation2 + $0x1] sm:$0x3f] }
  0x79   : > { %v293_v12 = vld [vmem:[#allocation2 + $0x2] sm:$0x3f]  ;;  %v264_v13 = vmul.f32 0.0010283801, %v263_v10  ;;  %v279_v14 = vmul.f32 0.007598758, %v278_v11 }
  0x7a   : > { %470 = vrot.lane.b32.xlu1 %v1320_v4, %s1084_s21  ;;  %v294_v15 = vmul.f32 0.036000773, %v293_v12  ;;  %v395_v16 = vadd.f32 %v394_v6, %v380_v9  ;;  %v308_v17 = vld [vmem:[#allocation2 + $0x3] sm:$0x3f]  ;;  %v1332_v22 = vmul.f32 0.21300554, %v1316_v0 }
  0x7b   : > { %v323_v18 = vld [vmem:[#allocation2 + $0x4] sm:$0x3f]  ;;  %v280_v19 = vadd.f32 %v279_v14, %v264_v13  ;;  %v309_v20 = vmul.f32 0.10936069, %v308_v17  ;;  %v1338_v29 = vmul.f32 0.007598758, %v1316_v0 }
  0x7c   : > { %v1327_v21 = vadd.f32 %v409_v7, %v395_v16  ;;  %v338_v23 = vld [vmem:[#allocation2 + $0x5] sm:$0x3f]  ;;  %v324_v25 = vmul.f32 0.21300554, %v323_v18  ;;  %v558_v30 = vmul.f32 0.26601171, %v1316_v0 }
  0x7d   : > { %v295_v24 = vadd.f32 %v294_v15, %v280_v19  ;;  %v368_v27 = vld [vmem:[#allocation2 + $0x7] sm:$0x3f]  ;;  %v339_v32 = vmul.f32 0.26601171, %v338_v23  ;;  %v354_v33 = vmul.f32 0.21300554, %v353_v26 }
  0x7e   : > { %500 = vrot.lane.b32.xlu1 %v1323_v8, %s1085_s11  ;;  %v1335_v28 = vmul.f32 0.007598758, %v1327_v21  ;;  %v369_v34 = vmul.f32 0.10936069, %v368_v27  ;;  %v383_v35 = vld [vmem:[#allocation2 + $0x8] sm:$0x3f] }
  0x7f   : > { %v310_v31 = vadd.f32 %v309_v20, %v295_v24  ;;  %v266_v37 = vld [vmem:[#allocation2 + $0x10] sm:$0x3f]  ;;  %v398_v44 = vld [vmem:[#allocation2 + $0x9] sm:$0x3f]  ;;  %v1348_v47 = vmul.f32 0.036000773, %v1327_v21 }
  0x80   : > { %434 = vrot.lane.b32.xlu0 %v1335_v28, %s1086_s18  ;;  %v281_v38 = vld [vmem:[#allocation2 + $0x11] sm:$0x3f]  ;;  %v267_v40 = vmul.f32 0.0010283801, %v266_v37  ;;  %v413_v48 = vld [vmem:[#allocation2 + $0xa] sm:$0x3f] }
  0x81   : > { %v325_v36 = vadd.f32 %v324_v25, %v310_v31  ;;  %v296_v39 = vld [vmem:[#allocation2 + $0x12] sm:$0x3f]  ;;  %v282_v41 = vmul.f32 0.007598758, %v281_v38  ;;  %v384_v52 = vmul.f32 0.036000773, %v383_v35 }
  0x82   : > { %530 = vrot.lane.b32.xlu1 %v1332_v22, %s1087_s30  ;;  %v297_v42 = vmul.f32 0.036000773, %v296_v39  ;;  %v311_v45 = vld [vmem:[#allocation2 + $0x13] sm:$0x3f]  ;;  %v1352_v54 = vmul.f32 0.10936069, %v1327_v21 }
  0x83   : > { %v340_v43 = vadd.f32 %v339_v32, %v325_v36  ;;  %v326_v46 = vld [vmem:[#allocation2 + $0x14] sm:$0x3f]  ;;  %v283_v49 = vadd.f32 %v282_v41, %v267_v40  ;;  %v312_v50 = vmul.f32 0.10936069, %v311_v45  ;;  %v399_v55 = vmul.f32 0.007598758, %v398_v44 }
  0x84   : > { %440 = vrot.lane.b32.xlu0 %v1338_v29, %s1086_s18  ;;  %v341_v53 = vld [vmem:[#allocation2 + $0x15] sm:$0x3f]  ;;  %v327_v57 = vmul.f32 0.21300554, %v326_v46  ;;  %v414_v59 = vmul.f32 0.0010283801, %v413_v48 }
  0x85   : > { %v355_v51 = vadd.f32 %v354_v33, %v340_v43  ;;  %v298_v56 = vadd.f32 %v297_v42, %v283_v49  ;;  %v356_v60 = vld [vmem:[#allocation2 + $0x16] sm:$0x3f]  ;;  %v269_v61 = vld [vmem:[#allocation2 + $0x20] sm:$0x3f]  ;;  %v342_v63 = vmul.f32 0.26601171, %v341_v53 }
  0x86   : > { %560 = vrot.lane.b32.xlu1 %v558_v30, %s1088_s5  ;;  %v371_v1 = vld [vmem:[#allocation2 + $0x17] sm:$0x3f]  ;;  %v270_v2 = vmul.f32 0.0010283801, %v269_v61  ;;  %v284_v5 = vld [vmem:[#allocation2 + $0x21] sm:$0x3f] }
  0x87   : > { %v370_v58 = vadd.f32 %v369_v34, %v355_v51  ;;  %v313_v62 = vadd.f32 %v312_v50, %v298_v56  ;;  %v299_v6 = vld [vmem:[#allocation2 + $0x22] sm:$0x3f]  ;;  %v357_v10 = vmul.f32 0.21300554, %v356_v60  ;;  %v285_v11 = vmul.f32 0.007598758, %v284_v5 }
  0x88   : > { %464 = vrot.lane.b32.xlu0 %v1348_v47, %s1084_s21  ;;  %v314_v7 = vld [vmem:[#allocation2 + $0x23] sm:$0x3f]  ;;  %v300_v12 = vmul.f32 0.036000773, %v299_v6  ;;  %v522_v13 = vmul.f32 0.21300554, %v1327_v21 }
  0x89   : > { %v385_v3 = vadd.f32 %v384_v52, %v370_v58  ;;  %v328_v9 = vadd.f32 %v327_v57, %v313_v62  ;;  %v386_v15 = vld [vmem:[#allocation2 + $0x18] sm:$0x3f]  ;;  %v372_v17 = vmul.f32 0.10936069, %v371_v1  ;;  %v286_v18 = vadd.f32 %v285_v11, %v270_v2  ;;  %v329_v24 = vld [vmem:[#allocation2 + $0x24] sm:$0x3f] }
  0x8a   : > { %v315_v19 = vmul.f32 0.10936069, %v314_v7  ;;  %v401_v23 = vld [vmem:[#allocation2 + $0x19] sm:$0x3f]  ;;  %v387_v26 = vmul.f32 0.036000773, %v386_v15 }
  0x8b   : > { %v400_v14 = vadd.f32 %v399_v55, %v385_v3  ;;  %v343_v16 = vadd.f32 %v342_v63, %v328_v9  ;;  %v301_v27 = vadd.f32 %v300_v12, %v286_v18  ;;  %v552_v31 = vmul.f32 0.26601171, %v1327_v21  ;;  %v416_v32 = vld [vmem:[#allocation2 + $0x1a] sm:$0x3f]  ;;  %v344_v37 = vld [vmem:[#allocation2 + $0x25] sm:$0x3f] }
  0x8c   : > { %494 = vrot.lane.b32.xlu0 %v1352_v54, %s1085_s11  ;;  %v402_v34 = vmul.f32 0.007598758, %v401_v23  ;;  %v330_v36 = vmul.f32 0.21300554, %v329_v24  ;;  %v417_v39 = vmul.f32 0.0010283801, %v416_v32 }
  0x8d   : > { %v1359_v20 = vadd.f32 %v414_v59, %v400_v14  ;;  %v358_v25 = vadd.f32 %v357_v10, %v343_v16  ;;  %v316_v35 = vadd.f32 %v315_v19, %v301_v27  ;;  %v345_v43 = vmul.f32 0.26601171, %v344_v37  ;;  %v359_v44 = vld [vmem:[#allocation2 + $0x26] sm:$0x3f] }
  0x8e   : > { %v360_v50 = vmul.f32 0.21300554, %v359_v44  ;;  %v374_v51 = vld [vmem:[#allocation2 + $0x27] sm:$0x3f] }
  0x8f   : > { %v1362_v30 = vmul.f32 0.007598758, %v1359_v20  ;;  %v373_v33 = vadd.f32 %v372_v17, %v358_v25  ;;  %v474_v41 = vmul.f32 0.036000773, %v1359_v20  ;;  %v331_v42 = vadd.f32 %v330_v36, %v316_v35  ;;  %v389_v57 = vld [vmem:[#allocation2 + $0x28] sm:$0x3f] }
  0x90   : > { %524 = vrot.lane.b32.xlu0 %v522_v13, %s1087_s30  ;;  %v504_v48 = vmul.f32 0.10936069, %v1359_v20  ;;  %v534_v53 = vmul.f32 0.21300554, %v1359_v20  ;;  %v375_v56 = vmul.f32 0.10936069, %v374_v51 }
  0x91   : > { %446 = vrot.lane.b32.xlu1 %v1362_v30, %s1086_s18  ;;  %v388_v38 = vadd.f32 %v387_v26, %v373_v33  ;;  %v346_v49 = vadd.f32 %v345_v43, %v331_v42  ;;  %v564_v59 = vmul.f32 0.26601171, %v1359_v20  ;;  %v390_v61 = vmul.f32 0.036000773, %v389_v57  ;;  %v404_v62 = vld [vmem:[#allocation2 + $0x29] sm:$0x3f] }
  0x92   : > { %v405_v2 = vmul.f32 0.007598758, %v404_v62  ;;  %v419_v3 = vld [vmem:[#allocation2 + $0x2a] sm:$0x3f] }
  0x93   : > { %v403_v40 = vadd.f32 %v402_v34, %v388_v38  ;;  %v361_v55 = vadd.f32 %v360_v50, %v346_v49  ;;  %v420_v7 = vmul.f32 0.0010283801, %v419_v3 }
  0x94   : > { %554 = vrot.lane.b32.xlu0 %v552_v31, %s1088_s5 }
  0x95   : > { %v1370_v45 = vadd.f32 %v417_v39, %v403_v40  ;;  %v376_v60 = vadd.f32 %v375_v56, %v361_v55 }
  0x97   : > { %v450_v46 = vmul.f32 0.007598758, %v1370_v45  ;;  %v480_v52 = vmul.f32 0.036000773, %v1370_v45  ;;  %v510_v58 = vmul.f32 0.10936069, %v1370_v45  ;;  %v391_v1 = vadd.f32 %v390_v61, %v376_v60 }
  0x98   : > { %476 = vrot.lane.b32.xlu0 %v474_v41, %s1084_s21  ;;  %v540_v63 = vmul.f32 0.21300554, %v1370_v45  ;;  %v570_v5 = vmul.f32 0.26601171, %v1370_v45  ;;  %v428_v12 = vmul.f32 0.0010283801, %v1370_v45 }
  0x99   : > { %452 = vrot.lane.b32.xlu1 %v450_v46, %s1086_s18  ;;  %v406_v6 = vadd.f32 %v405_v2, %v391_v1 }
  0x9b   : > { %v421_v9 = vadd.f32 %v420_v7, %v406_v6 }
  0x9c   : > { %506 = vrot.lane.b32.xlu0 %v504_v48, %s1085_s11 }
  0x9d   : > { %482 = vrot.lane.b32.xlu1 %v480_v52, %s1084_s21  ;;  %v456_v10 = vmul.f32 0.007598758, %v421_v9  ;;  %v576_v11 = vmul.f32 0.26601171, %v421_v9 }
  0xa0   : > { %536 = vrot.lane.b32.xlu0 %v534_v53, %s1087_s30 }
  0xa1   : > { %512 = vrot.lane.b32.xlu1 %v510_v58, %s1085_s11 }
  0xa4   : > { %566 = vrot.lane.b32.xlu0 %v564_v59, %s1088_s5 }
  0xa5   : > { %542 = vrot.lane.b32.xlu1 %v540_v63, %s1087_s30 }
  0xa8   : > { %582 = vrot.lane.b32.xlu0 %v522_v13, %s1089_s6 }
  0xa9   : > { %572 = vrot.lane.b32.xlu1 %v570_v5, %s1088_s5 }
  0xac   : > { %590 = vrot.lane.b32.xlu0 %v534_v53, %s1089_s6 }
  0xad   : > { %586 = vrot.lane.b32.xlu1 %v1332_v22, %s1089_s6  ;;  %v486_v22 = vmul.f32 0.036000773, %v421_v9 }
  0xb0   : > { %602 = vrot.lane.b32.xlu0 %v1352_v54, %s1090_s7  ;;  %v426_v54 = vmul.f32 0.0010283801, %v1359_v20 }
  0xb1   : > { %594 = vrot.lane.b32.xlu1 %v540_v63, %s1089_s6 }
  0xb4   : > { %458 = vrot.lane.b32.xlu0 %v456_v10, %s1086_s18 }
  0xb5   : > { %606 = vrot.lane.b32.xlu1 %v1323_v8, %s1090_s7  ;;  %v516_v8 = vmul.f32 0.10936069, %v421_v9 }
  0xb8   : > { %614 = vrot.lane.b32.xlu0 %v510_v58, %s1090_s7 }
  0xb9   : > { %610 = vrot.lane.b32.xlu1 %v504_v48, %s1090_s7 }
  0xbc   : > { %626 = vrot.lane.b32.xlu0 %v1320_v4, %s1091_s15  ;;  %v424_v4 = vmul.f32 0.0010283801, %v1316_v0  ;;  %v1421_v0 = vmul.f32 0.0010283801, %v421_v9 }
  0xbd   : > { %622 = vrot.lane.b32.xlu1 %v1348_v47, %s1091_s15  ;;  %v422_v47 = vmul.f32 0.0010283801, %v1327_v21 }
  0xc0   : > { %630 = vrot.lane.b32.xlu0 %v474_v41, %s1091_s15 }
  0xc1   : > { %488 = vrot.lane.b32.xlu1 %v486_v22, %s1084_s21 }
  0xc4   : > { %642 = vrot.lane.b32.xlu0 %v1335_v28, %s1092_s12  ;;  %v546_v28 = vmul.f32 0.21300554, %v421_v9 }
  0xc5   : > { %634 = vrot.lane.b32.xlu1 %v480_v52, %s1091_s15 }
  0xc8   : > { %518 = vrot.lane.b32.xlu0 %v516_v8, %s1085_s11 }
  0xc9   : > { %646 = vrot.lane.b32.xlu1 %v1338_v29, %s1092_s12 }
  0xcc   : > { %654 = vrot.lane.b32.xlu0 %v450_v46, %s1092_s12 }
  0xcd   : > { %650 = vrot.lane.b32.xlu1 %v1362_v30, %s1092_s12 }
  0xd0   : > { %668 = vrot.lane.b32.xlu0 %v424_v4, %s1093_s26 }
  0xd1   : > { %663 = vrot.lane.b32.xlu1 %v422_v47, %s1093_s26 }
  0xd4   : > { %673 = vrot.lane.b32.xlu0 %v426_v54, %s1093_s26 }
  0xd5   : > { %548 = vrot.lane.b32.xlu1 %v546_v28, %s1087_s30 }
  0xd8   : > { %578 = vrot.lane.b32.xlu0 %v576_v11, %s1088_s5 }
  0xd9   : > { %678 = vrot.lane.b32.xlu1 %v428_v12, %s1093_s26 }
  0xdc   : > { %618 = vrot.lane.b32.xlu0 %v516_v8, %s1090_s7 }
  0xdd   : > { %598 = vrot.lane.b32.xlu1 %v546_v28, %s1089_s6 }
  0xe0   : > { %658 = vrot.lane.b32.xlu0 %v456_v10, %s1092_s12 }
  0xe1   : > { %638 = vrot.lane.b32.xlu1 %v486_v22, %s1091_s15 }
  0xe5   : > { %683 = vrot.lane.b32.xlu1 %v1421_v0, %s1093_s26 }
  0xec   : > { %v471_v21 = vpop.permute.xlu1 %470 }
  0xf0   : > { %v501_v14 = vpop.permute.xlu1 %500 }
  0xf2   : > { %v435_v29 = vpop.permute.xlu0 %434 }
  0xf3   : > { %v437_v13 = vadd.f32 %v435_v29, %v422_v47 }
  0xf4   : > { %v531_v18 = vpop.permute.xlu1 %530 }
  0xf6   : > { %v441_v15 = vpop.permute.xlu0 %440 }
  0xf7   : > { %v443_v16 = vadd.f32 %v441_v15, %v424_v4 }
  0xf8   : > { %v561_v24 = vpop.permute.xlu1 %560 }
  0xf9   : > { %v473_v17 = vadd.f32 %v471_v21, %v443_v16 }
  0xfa   : > { %v465_v19 = vpop.permute.xlu0 %464 }
  0xfb   : > { %v503_v20 = vadd.f32 %v501_v14, %v473_v17  ;;  %v467_v55 = vadd.f32 %v465_v19, %v437_v13 }
  0xfd   : > { %v533_v53 = vadd.f32 %v531_v18, %v503_v20 }
  0xfe   : > { %v495_v23 = vpop.permute.xlu0 %494 }
  0xff   : > { %v497_v58 = vadd.f32 %v495_v23, %v467_v55  ;;  %v563_v62 = vadd.f32 %v561_v24, %v533_v53 }
 0x102   : > { %v525_v25 = vpop.permute.xlu0 %524 }
 0x103   : > { %v447_v26 = vpop.permute.xlu1 %446  ;;  %v527_v63 = vadd.f32 %v525_v25, %v497_v58 }
 0x104   : > { %v449_v56 = vadd.f32 %v447_v26, %v426_v54 }
 0x106   : > { %v555_v27 = vpop.permute.xlu0 %554 }
 0x107   : > { %v557_v3 = vadd.f32 %v555_v27, %v527_v63 }
 0x10a   : > { %v477_v30 = vpop.permute.xlu0 %476 }
 0x10b   : > { %v453_v31 = vpop.permute.xlu1 %452  ;;  %v479_v59 = vadd.f32 %v477_v30, %v449_v56 }
 0x10c   : > { %v455_v60 = vadd.f32 %v453_v31, %v428_v12 }
 0x10e   : > { %v507_v32 = vpop.permute.xlu0 %506 }
 0x10f   : > { %v483_v33 = vpop.permute.xlu1 %482  ;;  %v509_v1 = vadd.f32 %v507_v32, %v479_v59 }
 0x110   : > { %v485_v7 = vadd.f32 %v483_v33, %v455_v60 }
 0x112   : > { %v537_v34 = vpop.permute.xlu0 %536 }
 0x113   : > { %v513_v35 = vpop.permute.xlu1 %512  ;;  %v539_v5 = vadd.f32 %v537_v34, %v509_v1 }
 0x114   : > { %v515_v4 = vadd.f32 %v513_v35, %v485_v7 }
 0x116   : > { %v567_v36 = vpop.permute.xlu0 %566 }
 0x117   : > { %v543_v37 = vpop.permute.xlu1 %542  ;;  %v569_v10 = vadd.f32 %v567_v36, %v539_v5 }
 0x118   : > { %v545_v21 = vadd.f32 %v543_v37, %v515_v4 }
 0x11a   : > { %v583_v38 = vpop.permute.xlu0 %582 }
 0x11b   : > { %v573_v39 = vpop.permute.xlu1 %572  ;;  %v585_v22 = vadd.f32 %v583_v38, %v557_v3 }
 0x11c   : > { %v575_v15 = vadd.f32 %v573_v39, %v545_v21 }
 0x11e   : > { %v591_v40 = vpop.permute.xlu0 %590 }
 0x11f   : > { %v587_v41 = vpop.permute.xlu1 %586  ;;  %v593_v54 = vadd.f32 %v591_v40, %v569_v10 }
 0x120   : > { %v589_v6 = vadd.f32 %v587_v41, %v563_v62 }
 0x122   : > { %v603_v42 = vpop.permute.xlu0 %602 }
 0x123   : > { %v595_v43 = vpop.permute.xlu1 %594  ;;  %v605_v28 = vadd.f32 %v603_v42, %v585_v22 }
 0x124   : > { %v597_v20 = vadd.f32 %v595_v43, %v575_v15 }
 0x126   : > { %v459_v44 = vpop.permute.xlu0 %458 }
 0x127   : > { %v607_v45 = vpop.permute.xlu1 %606  ;;  %v461_v24 = vadd.f32 %v459_v44, %v1421_v0 }
 0x128   : > { %v609_v8 = vadd.f32 %v607_v45, %v589_v6 }
 0x12a   : > { %v615_v46 = vpop.permute.xlu0 %614 }
 0x12b   : > { %v611_v48 = vpop.permute.xlu1 %610  ;;  %v617_v30 = vadd.f32 %v615_v46, %v597_v20 }
 0x12c   : > { %v613_v29 = vadd.f32 %v611_v48, %v593_v54 }
 0x12e   : > { %v627_v49 = vpop.permute.xlu0 %626 }
 0x12f   : > { %v623_v50 = vpop.permute.xlu1 %622  ;;  %v629_v11 = vadd.f32 %v627_v49, %v609_v8  ;;  %v701_v49 = vstv %s1425_s19 }
 0x130   : > { %v625_v13 = vadd.f32 %v623_v50, %v605_v28 }
 0x132   : > { %v631_v51 = vpop.permute.xlu0 %630 }
 0x133   : > { %v489_v52 = vpop.permute.xlu1 %488  ;;  %v633_v17 = vadd.f32 %v631_v51, %v613_v29  ;;  %v696_v51 = vstv %s1427_s27 }
 0x134   : > { %v491_v32 = vadd.f32 %v489_v52, %v461_v24 }
 0x136   : > { %v643_v57 = vpop.permute.xlu0 %642 }
 0x137   : > { %v635_v61 = vpop.permute.xlu1 %634  ;;  %v645_v18 = vadd.f32 %v643_v57, %v625_v13 }
 0x138   : > { %v637_v37 = vadd.f32 %v635_v61, %v617_v30 }
 0x13a   : > { %v519_v2 = vpop.permute.xlu0 %518 }
 0x13b   : > { %v647_v9 = vpop.permute.xlu1 %646  ;;  %v521_v38 = vadd.f32 %v519_v2, %v491_v32 }
 0x13c   : > { %v649_v14 = vadd.f32 %v647_v9, %v629_v11 }
 0x13e   : > { %v655_v47 = vpop.permute.xlu0 %654 }
 0x13f   : > { %v651_v12 = vpop.permute.xlu1 %650  ;;  %v657_v41 = vadd.f32 %v655_v47, %v637_v37 }
 0x140   : > { %v653_v25 = vadd.f32 %v651_v12, %v633_v17 }
 0x142   : > { %v669_v16 = vpop.permute.xlu0 %668 }
 0x143   : > { %v671_v19 = vadd.f32 %v669_v16, %v649_v14  ;;  %v664_v23 = vpop.permute.xlu1 %663 }
 0x144   : > { %v666_v26 = vadd.f32 %v664_v23, %v645_v18 }
 0x145   : > { %v690_v27 = vmul.f32 %v671_v19, %v671_v19 }
 0x146   : > { %v674_v31 = vpop.permute.xlu0 %673  ;;  %v689_v33 = vmul.f32 %v666_v26, %v666_v26  ;;  %v691_v34 = vmul.f32 %v671_v19, %v666_v26 }
 0x147   : > { %v676_v35 = vadd.f32 %v674_v31, %v653_v25  ;;  %v549_v36 = vpop.permute.xlu1 %548 }
 0x148   : > { %v704_v39 = vadd.f32 %v690_v27, %v689_v33  ;;  %v551_v42 = vadd.f32 %v549_v36, %v521_v38  ;;  %v700_v2 = vmul.f32 2.0, %v691_v34 }
 0x149   : > { %v692_v0 = vsub.f32 %v676_v35, %v689_v33 }
 0x14a   : > { %v579_v40 = vpop.permute.xlu0 %578  ;;  %v705_v55 = vadd.f32 %v704_v39, %v701_v49  ;;  %v702_v6 = vadd.f32 %v701_v49, %v700_v2 }
 0x14b   : > { %v679_v43 = vpop.permute.xlu1 %678  ;;  %v581_v45 = vadd.f32 %v579_v40, %v551_v42 }
 0x14c   : > { %v681_v44 = vadd.f32 %v679_v43, %v657_v41 }
 0x14e   : > { %v619_v46 = vpop.permute.xlu0 %618  ;;  %v693_v48 = vsub.f32 %v681_v44, %v690_v27 }
 0x14f   : > { %v599_v50 = vpop.permute.xlu1 %598 }
 0x150   : > { %v698_v52 = vadd.f32 %v693_v48, %v692_v0  ;;  %v601_v53 = vadd.f32 %v599_v50, %v581_v45 }
 0x152   : > { %v621_v56 = vadd.f32 %v619_v46, %v601_v53  ;;  %v699_v57 = vadd.f32 %v698_v52, %v696_v51  ;;  %v659_v59 = vpop.permute.xlu0 %658 }
 0x153   : > { %v639_v58 = vpop.permute.xlu1 %638 }
 0x154   : > { %v641_v60 = vadd.f32 %v639_v58, %v621_v56  ;;  %v706_v61 = vmul.f32 %v705_v55, %v699_v57 }
 0x156   : > { %v661_v62 = vadd.f32 %v659_v59, %v641_v60  ;;  %960 = vrcp.f32 %v706_v61 }
 0x157   : > { %v684_v63 = vpop.permute.xlu1 %683 }
 0x158   : > { %v686_v1 = vadd.f32 %v684_v63, %v661_v62 }
 0x15a   : > { %v694_v3 = vsub.f32 %v686_v1, %v691_v34 }
 0x15c   : > { %v695_v5 = vmul.f32 2.0, %v694_v3 }
 0x15e   : > { %v697_v7 = vadd.f32 %v696_v51, %v695_v5 }
 0x160   : > { %v703_v9 = vmul.f32 %v702_v6, %v697_v7  ;;  %v961_v10 = vpop.eup %960 }
 0x162   : > { %v708_v22 = vmul.f32 %v961_v10, %v703_v9 }
 0x164   : > { %737 = vrot.lane.b32.xlu1 %v708_v22, %s1094_s25  ;;  %722 = vrot.lane.b32.xlu0 %v708_v22, %s1095_s8  ;;  %v710_v8 = vsel %vm709_vm0, %v708_v22, 0.0 }
 0x168   : > { %752 = vrot.lane.b32.xlu0 %v708_v22, %s1096_s9 }
 0x188   : > { %711 = vadd.xlane.f32.xlu1 %v710_v8 }
 0x1d6   : > { %v723_v4 = vpop.permute.xlu0 %722  ;;  %v738_v54 = vpop.permute.xlu1 %737 }
 0x1d7   : > { %v725_v47 = vsel %vm709_vm0, %v723_v4, 0.0  ;;  %v740_v11 = vsel %vm709_vm0, %v738_v54, 0.0 }
 0x1d8   : > { %726 = vadd.xlane.f32.xlu0 %v725_v47 }
 0x1da   : > { %v753_v28 = vpop.permute.xlu0 %752 }
 0x1db   : > { %v755_v21 = vsel %vm709_vm0, %v753_v28, 0.0 }
 0x1dc   : > { %741 = vadd.xlane.f32.xlu0 %v740_v11  ;;  %756 = vadd.xlane.f32.xlu1 %v755_v21 }
 0x215   : > { %v712_v12 = vpop.xlane.xlu1 %711 }
 0x216   : > { %v713_v29 = vrot.slane %v712_v12, 4 }
 0x218   : > { %v714_v13 = vadd.f32 %v713_v29, %v712_v12 }
 0x21a   : > { %v715_v14 = vrot.slane %v714_v13, 2 }
 0x21c   : > { %v716_v15 = vadd.f32 %v715_v14, %v714_v13 }
 0x21e   : > { %v717_v16 = vrot.slane %v716_v15, 1 }
 0x220   : > { %v718_v17 = vadd.f32 %v717_v16, %v716_v15 }
 0x222   : > { %882 = vpush %v718_v17 }
 0x253   : > { %s883_s10 = spop %882 }
 0x254   : > { %v720_v43 = vstv %s883_s10 }
 0x265   : > { %v727_v18 = vpop.xlane.xlu0 %726 }
 0x266   : > { %v728_v19 = vrot.slane %v727_v18, 4 }
 0x268   : > { %v729_v20 = vadd.f32 %v728_v19, %v727_v18 }
 0x269   : > { %v742_v23 = vpop.xlane.xlu0 %741  ;;  %v757_v24 = vpop.xlane.xlu1 %756 }
 0x26a   : > { %v730_v25 = vrot.slane %v729_v20, 2  ;;  %v743_v26 = vrot.slane %v742_v23, 4  ;;  %v758_v27 = vrot.slane %v757_v24, 4 }
 0x26c   : > { %v744_v30 = vadd.f32 %v743_v26, %v742_v23  ;;  %v759_v31 = vadd.f32 %v758_v27, %v757_v24  ;;  %v731_v32 = vadd.f32 %v730_v25, %v729_v20 }
 0x26e   : > { %v745_v33 = vrot.slane %v744_v30, 2  ;;  %v760_v34 = vrot.slane %v759_v31, 2  ;;  %v732_v35 = vrot.slane %v731_v32, 1 }
 0x270   : > { %v746_v36 = vadd.f32 %v745_v33, %v744_v30  ;;  %v761_v37 = vadd.f32 %v760_v34, %v759_v31  ;;  %v733_v38 = vadd.f32 %v732_v35, %v731_v32 }
 0x272   : > { %884 = vpush %v733_v38  ;;  %v747_v39 = vrot.slane %v746_v36, 1  ;;  %v762_v0 = vrot.slane %v761_v37, 1 }
 0x274   : > { %v748_v40 = vadd.f32 %v747_v39, %v746_v36  ;;  %v763_v41 = vadd.f32 %v762_v0, %v761_v37 }
 0x276   : > { %886 = vpush %v748_v40 }
 0x277   : > { %888 = vpush %v763_v41 }
 0x2a3   : > { %s885_s24 = spop %884 }
 0x2a4   : > { %v735_v42 = vstv %s885_s24 }
 0x2a5   : > { %v736_v44 = vadd.f32 %v735_v42, %v720_v43 }
 0x2a7   : > { %s887_s28 = spop %886 }
 0x2a8   : > { %v750_v45 = vstv %s887_s28  ;;  %s889_s29 = spop %888 }
 0x2a9   : > { %v751_v46 = vadd.f32 %v750_v45, %v736_v44  ;;  %v765_v48 = vstv %s889_s29 }
 0x2ab   : > { %v766_v49 = vadd.f32 %v765_v48, %v751_v46 }
 0x2ad   : > { %768 = vst.msk [vmem:[%s238_s23] sm:$0x1] %vm767_vm1, %v766_v49 }
 0x2ae PF: > { %p17_p12 = scmp.ge.s32.totalorder %s1139_s17, 4   ;;  %s1461_s12 = smov %s1069_s13 }
 0x2af   : > { %s1462_s13 = smov %s1073_s14  ;;  %s1463_s14 = smov %s1149_s20 }
 0x2b0   : > { %s1464_s15 = smov %s1139_s17  ;;  %19 = sbr.rel (!%p17_p12) target bundleno = 6 (0x6), region = 92 }
 0x2b7   :  { %786 = vsyncpa [#allocation4], 1 }
 0x2b8   :  { %788 = vsyncpa [#allocation4 + $0x1], 1 }
 0x2b9   :  { %789 = vsyncpa [#allocation8], 1 }
 0x2ba   :  { %791 = vsyncpa [#allocation8 + $0x1], 1 }
 0x2bb   :  { %792 = vsyncpa [#allocation5], 1 }
 0x2bc   :  { %794 = vsyncpa [#allocation5 + $0x1], 1 }

</bundles_post_ra>
